<compile_context>
chip_gen: v7x
topology: tpu7x:2x2x1
jax: 0.10.0
libtpu: 0.0.40
codegen_flags: <defaults>
</compile_context>

<pallas_src>
import math
import functools

import jax
import jax.numpy as jnp
import numpy as np
from jax import lax
from jax.experimental import pallas as pl
from jax.experimental.pallas import tpu as pltpu

_PI = 3.141592653589793
_PI_2 = 1.5707963267948966
_PI_4 = 0.7853981633974483
_TAN_PI_8 = 0.4142135623730951


def _atan_01(t):
    """atan(t) for t in [0, 1] (f32), octant reduction + minimax polynomial."""
    use_red = t > _TAN_PI_8
    tr = jnp.where(use_red, (t - 1.0) / (t + 1.0), t)
    z = tr * tr
    p = (((8.05374449538e-2 * z - 1.38776856032e-1) * z
          + 1.99777106478e-1) * z - 3.33329491539e-1) * z * tr + tr
    return jnp.where(use_red, p + _PI_4, p)


def _atan2(y, x):
    """atan2(y, x) from elementwise ops only; matches torch.atan2 to ~1e-7 rad."""
    ax = jnp.abs(x)
    ay = jnp.abs(y)
    mx = jnp.maximum(ax, ay)
    mn = jnp.minimum(ax, ay)
    t = mn / jnp.maximum(mx, 1e-37)
    a = _atan_01(t)
    a = jnp.where(ay > ax, _PI_2 - a, a)
    a = jnp.where(x < 0.0, _PI - a, a)
    a = jnp.where(y < 0.0, -a, a)
    return a


def _hog_kernel(x_ref, pw_ref, ph_ref, lsum_ref, rsum_ref, out_ref, *,
                nbins, bin_scale, h, w, rb, g, wp):
    R = rb * h                 # rows of the packed block (rb plane row-groups)
    W = g * w                  # lanes of the packed block (g planes side by side)
    gwp = g * wp
    xp = x_ref[...]            # (R, W) f32

    # Boundary masks for the conv's implicit zero padding (per packed plane).
    row = lax.broadcasted_iota(jnp.int32, (R, W), 0)
    col = lax.broadcasted_iota(jnp.int32, (R, W), 1)
    rmod = (row & (h - 1)) if (h & (h - 1)) == 0 else lax.rem(row, h)
    cmod = (col & (w - 1)) if (w & (w - 1)) == 0 else lax.rem(col, w)
    top, bot = rmod == 0, rmod == h - 1
    left, right = cmod == 0, cmod == w - 1

    # Separable Sobel via XLU rolls + boundary masks (no halo DMA, no padding).
    xl = jnp.where(left, 0.0, pltpu.roll(xp, 1, axis=1))         # x[., j-1]
    xr = jnp.where(right, 0.0, pltpu.roll(xp, W - 1, axis=1))    # x[., j+1]
    dxh = xl - xr                                                # horiz diff
    sh = xl + 2.0 * xp + xr                                      # horiz smooth
    gx = (jnp.where(top, 0.0, pltpu.roll(dxh, 1, axis=0))
          + 2.0 * dxh
          + jnp.where(bot, 0.0, pltpu.roll(dxh, R - 1, axis=0)))
    gy = (jnp.where(top, 0.0, pltpu.roll(sh, 1, axis=0))
          - jnp.where(bot, 0.0, pltpu.roll(sh, R - 1, axis=0)))

    mag = jnp.sqrt(gx * gx + gy * gy)                  # gxy.norm(dim=1)
    omm = 1.0 - mag                                    # hoisted out of the bin loop
    nb = float(nbins)
    pb = _atan2(gx, gy) * bin_scale                    # phase / max_angle * nbins
    fbf = jnp.floor(pb)
    cbf = fbf + (pb != fbf).astype(jnp.float32)        # ceil = floor + (frac != 0)
    # torch floor-mod kept in f32: raw values lie in [-nbins, nbins]; one "+nbins"
    # wrap, the residual ==nbins case is absorbed into bin 0 below.
    fbw = jnp.where(fbf < 0.0, fbf + nb, fbf)
    cbw = jnp.where(cbf < 0.0, cbf + nb, cbf)

    pwb = pw_ref[...]       # (g*w,  g*wp)    block-diag column avg-pool
    phb = ph_ref[...]       # (rb*hp, rb*h)   block-diag row avg-pool
    lsb = lsum_ref[...]     # (g*wp, g*wp)    per-lane-group sum broadcast
    rsb = rsum_ref[...]     # (rb*hp, rb*hp)  per-row-group sum broadcast

    for b in range(nbins):
        bf = float(b)
        fsel = fbw == bf
        csel = cbw == bf
        if b == 0:                                     # phase == +pi lands in bin 0
            fsel = fsel | (fbw == nb)
            csel = csel | (cbw == nb)
        # Soft scatter (scatter_ + scatter_add_) for this bin only.
        hist = jnp.where(fsel, mag, 0.0) + jnp.where(csel, omm, 0.0)     # (R, W)
        hc = jnp.dot(hist, pwb, preferred_element_type=jnp.float32)      # (R, g*wp)
        po = jnp.dot(phb, hc, preferred_element_type=jnp.float32)        # (rb*hp, g*wp)
        # F.normalize(dim=-1) per (plane, bin): block sum via two tiny matmuls,
        # rsqrt on the EUP, then scale.
        ss = jnp.dot(po * po, lsb, preferred_element_type=jnp.float32)
        ss = jnp.dot(rsb, ss, preferred_element_type=jnp.float32)
        out_ref[:, b * gwp:(b + 1) * gwp] = po * lax.rsqrt(jnp.maximum(ss, 1e-24))


def hog_layer_pallas(x, *, nbins=10, pool=8, max_angle=math.pi):
    n, c, h, w = x.shape
    assert c == 1, "HOGLayer conv weight is (2,1,3,3): input must be single channel"
    assert h % pool == 0 and w % pool == 0
    hp, wp = h // pool, w // pool

    # ---- block geometry -----------------------------------------------------
    g = max(1, 128 // w)                   # planes packed side by side along lanes
    plane_bytes = g * h * w * 4
    try:
        vmem_cap = int(pltpu.get_tpu_info().vmem_capacity_bytes)
    except Exception:
        vmem_cap = 64 * 1024 * 1024        # conservative (v7x per-TC VMEM)
    ws_budget = vmem_cap // 4              # per-step working-set budget
    rb_vmem = max(1, ws_budget // (16 * plane_bytes))
    rb_compute = max(1, -(-(64 * 1024) // (g * h * w)))   # >= ~64K pixels per step
    rb = max(1, min(rb_vmem, rb_compute))
    if n > g:                              # keep >= 2 grid steps (v7x megacore)
        rb = min(rb, max(1, -(-n // (2 * g))))
    rb = min(rb, max(1, -(-n // g)))       # never larger than the batch needs
    bt = rb * g                            # planes per grid step
    S = -(-n // bt)                        # grid size
    n_pad = S * bt
    # TODO(synk): for images too large to hold ~16 f32 planes in VMEM at rb=1,
    # add width tiling; not needed for typical ReID crops.

    # ---- host-side layout: pack g planes along the lane axis -----------------
    xs = x.reshape(n, h, w).astype(jnp.float32)
    if n_pad != n:
        xs = jnp.pad(xs, ((0, n_pad - n), (0, 0), (0, 0)))   # zero planes: harmless
    xs = (xs.reshape(S, rb, g, h, w)
            .transpose(0, 1, 3, 2, 4)
            .reshape(S, rb * h, g * w))

    # ---- deterministic pooling / normalization matrices (host constants) -----
    ph = (np.arange(h)[None, :] // pool
          == np.arange(hp)[:, None]).astype(np.float32) / pool          # (hp, h)
    pw = (np.arange(w)[:, None] // pool
          == np.arange(wp)[None, :]).astype(np.float32) / pool          # (w, wp)
    pw_blk = np.kron(np.eye(g, dtype=np.float32), pw)                   # (g*w, g*wp)
    ph_blk = np.kron(np.eye(rb, dtype=np.float32), ph)                  # (rb*hp, rb*h)
    lsum = np.kron(np.eye(g, dtype=np.float32),
                   np.ones((wp, wp), np.float32))                       # (g*wp, g*wp)
    rsum = np.kron(np.eye(rb, dtype=np.float32),
                   np.ones((hp, hp), np.float32))                       # (rb*hp, rb*hp)

    kernel = functools.partial(_hog_kernel, nbins=nbins,
                               bin_scale=float(nbins / max_angle),
                               h=h, w=w, rb=rb, g=g, wp=wp)
    # TODO(synk): mark the 4 constant operands pipeline_mode=pl.Buffered(1) once
    # single-buffered inputs are confirmed supported; halves their VMEM footprint.
    out = pl.pallas_call(
        kernel,
        out_shape=jax.ShapeDtypeStruct((S, rb * hp, nbins * g * wp), jnp.float32),
        grid_spec=pltpu.PrefetchScalarGridSpec(
            num_scalar_prefetch=0,
            grid=(S,),
            in_specs=[
                pl.BlockSpec((None, rb * h, g * w), lambda i: (i, 0, 0)),
                pl.BlockSpec((g * w, g * wp), lambda i: (0, 0)),
                pl.BlockSpec((rb * hp, rb * h), lambda i: (0, 0)),
                pl.BlockSpec((g * wp, g * wp), lambda i: (0, 0)),
                pl.BlockSpec((rb * hp, rb * hp), lambda i: (0, 0)),
            ],
            out_specs=pl.BlockSpec((None, rb * hp, nbins * g * wp),
                                   lambda i: (i, 0, 0)),
        ),
        compiler_params=pltpu.CompilerParams(
            dimension_semantics=("parallel",),          # shard batch steps over TCs
            vmem_limit_bytes=int(min(vmem_cap * 3 // 4, 112 * 1024 * 1024)),
        ),
    )(xs, jnp.asarray(pw_blk), jnp.asarray(ph_blk),
      jnp.asarray(lsum), jnp.asarray(rsum))

    # Rows are (rowgroup, hp), lanes are (bin, lanegroup, wp); plane index is
    # step*bt + rowgroup*g + lanegroup.  Tiny output -> host reshuffle is cheap.
    out = (out.reshape(S, rb, hp, nbins, g, wp)
              .transpose(0, 1, 4, 3, 2, 5)
              .reshape(n_pad, nbins * hp * wp))
    return out[:n]


def hog_layer_reference(x, *, nbins=10, pool=8, max_angle=math.pi):
    """Pure-JAX reference mirroring the PyTorch forward, for verification."""
    n, c, h, w = x.shape
    sob = jnp.array([[1., 0., -1.], [2., 0., -2.], [1., 0., -1.]], jnp.float32)
    wgt = jnp.stack([sob, sob.T])[:, None]  # (2, 1, 3, 3)
    gxy = jax.lax.conv_general_dilated(
        x.astype(jnp.float32), wgt, (1, 1), ((1, 1), (1, 1)),
        dimension_numbers=("NCHW", "OIHW", "NCHW"))
    gx, gy = gxy[:, 0], gxy[:, 1]
    mag = jnp.sqrt(gx * gx + gy * gy)
    pb = jnp.arctan2(gx, gy) / max_angle * nbins
    fb = jnp.mod(jnp.floor(pb).astype(jnp.int32), nbins)
    cb = jnp.mod(jnp.ceil(pb).astype(jnp.int32), nbins)
    bins = jnp.arange(nbins)[None, :, None, None]
    out = ((fb[:, None] == bins) * mag[:, None]
           + (cb[:, None] == bins) * (1.0 - mag[:, None]))
    hp, wp = h // pool, w // pool
    res = out.reshape(n, nbins, hp, pool, wp, pool).mean(axis=(3, 5))
    flat = res.reshape(n, nbins, -1)
    nrm = jnp.sqrt(jnp.sum(flat * flat, axis=-1, keepdims=True))
    flat = flat / jnp.maximum(nrm, 1e-12)
    return flat.reshape(n, -1)


if __name__ == "__main__":
    key = jax.random.PRNGKey(0)

    # Case 1: square 16x16 single-channel crops (W=16 -> 8 planes per lane group).
    x1 = jax.random.normal(key, (2, 1, 16, 16), dtype=jnp.float32)
    y1 = jax.block_until_ready(hog_layer_pallas(x1))
    assert y1.shape == (2, 10 * 2 * 2)
    np.testing.assert_allclose(np.asarray(y1), np.asarray(hog_layer_reference(x1)),
                               atol=2e-4, rtol=2e-4)

    # Case 2: non-square 16x32 crops with batch padding (exercises packing layout).
    x2 = jax.random.normal(jax.random.PRNGKey(1), (3, 1, 16, 32), dtype=jnp.float32)
    y2 = jax.block_until_ready(hog_layer_pallas(x2))
    assert y2.shape == (3, 10 * 2 * 4)
    np.testing.assert_allclose(np.asarray(y2), np.asarray(hog_layer_reference(x2)),
                               atol=2e-4, rtol=2e-4)

    print("KERNEL_OK")
</pallas_src>

<mosaic_0001>
module attributes {stable_mosaic.version = 11 : i64} {
  func.func @_hog_kernel(%arg0: i32, %arg1: memref<1x16x128xf32, #tpu.memory_space<vmem>>, %arg2: memref<128x16xf32, #tpu.memory_space<vmem>>, %arg3: memref<2x16xf32, #tpu.memory_space<vmem>>, %arg4: memref<16x16xf32, #tpu.memory_space<vmem>>, %arg5: memref<2x2xf32, #tpu.memory_space<vmem>>, %arg6: memref<1x2x160xf32, #tpu.memory_space<vmem>>) attributes {dimension_semantics = [#tpu.dimension_semantics<parallel>], iteration_bounds = array<i64: 1>, scalar_prefetch = 0 : i64, scratch_operands = 0 : i64, tpu.core_type = #tpu.core_type<tc>, window_params = [{transform_indices = @transform_0, window_bounds = array<i64: 1, 16, 128>}, {pipeline_mode = #tpu.pipeline_mode<synchronous>, transform_indices = @transform_1, window_bounds = array<i64: 128, 16>}, {pipeline_mode = #tpu.pipeline_mode<synchronous>, transform_indices = @transform_2, window_bounds = array<i64: 2, 16>}, {pipeline_mode = #tpu.pipeline_mode<synchronous>, transform_indices = @transform_3, window_bounds = array<i64: 16, 16>}, {pipeline_mode = #tpu.pipeline_mode<synchronous>, transform_indices = @transform_4, window_bounds = array<i64: 2, 2>}, {transform_indices = @transform_5, window_bounds = array<i64: 1, 2, 160>}]} {
    %c0 = arith.constant 0 : index
    %c0_0 = arith.constant 0 : index
    %c0_1 = arith.constant 0 : index
    %0 = vector.load %arg1[%c0, %c0_0, %c0_1] : memref<1x16x128xf32, #tpu.memory_space<vmem>>, vector<1x16x128xf32>
    %1 = vector.shape_cast %0 : vector<1x16x128xf32> to vector<16x128xf32>
    %2 = tpu.iota {dimensions = array<i32: 0>} : vector<16x128xi32>
    %3 = tpu.iota {dimensions = array<i32: 1>} : vector<16x128xi32>
    %c15_i32 = arith.constant 15 : i32
    %4 = vector.broadcast %c15_i32 : i32 to vector<16x128xi32>
    %5 = arith.andi %2, %4 : vector<16x128xi32>
    %c15_i32_2 = arith.constant 15 : i32
    %6 = vector.broadcast %c15_i32_2 : i32 to vector<16x128xi32>
    %7 = arith.andi %3, %6 : vector<16x128xi32>
    %c0_i32 = arith.constant 0 : i32
    %8 = vector.broadcast %c0_i32 : i32 to vector<16x128xi32>
    %9 = arith.cmpi eq, %5, %8 : vector<16x128xi32>
    %c15_i32_3 = arith.constant 15 : i32
    %10 = vector.broadcast %c15_i32_3 : i32 to vector<16x128xi32>
    %11 = arith.cmpi eq, %5, %10 : vector<16x128xi32>
    %c0_i32_4 = arith.constant 0 : i32
    %12 = vector.broadcast %c0_i32_4 : i32 to vector<16x128xi32>
    %13 = arith.cmpi eq, %7, %12 : vector<16x128xi32>
    %c15_i32_5 = arith.constant 15 : i32
    %14 = vector.broadcast %c15_i32_5 : i32 to vector<16x128xi32>
    %15 = arith.cmpi eq, %7, %14 : vector<16x128xi32>
    %c1_i32 = arith.constant 1 : i32
    %16 = tpu.dynamic_rotate %1 by %c1_i32 dim 1 : vector<16x128xf32>, i32 -> vector<16x128xf32>
    %cst = arith.constant 0.000000e+00 : f32
    %17 = vector.broadcast %cst : f32 to vector<16x128xf32>
    %18 = arith.select %13, %17, %16 : vector<16x128xi1>, vector<16x128xf32>
    %c127_i32 = arith.constant 127 : i32
    %19 = tpu.dynamic_rotate %1 by %c127_i32 dim 1 : vector<16x128xf32>, i32 -> vector<16x128xf32>
    %cst_6 = arith.constant 0.000000e+00 : f32
    %20 = vector.broadcast %cst_6 : f32 to vector<16x128xf32>
    %21 = arith.select %15, %20, %19 : vector<16x128xi1>, vector<16x128xf32>
    %22 = arith.subf %18, %21 : vector<16x128xf32>
    %cst_7 = arith.constant 2.000000e+00 : f32
    %23 = vector.broadcast %cst_7 : f32 to vector<16x128xf32>
    %24 = arith.mulf %23, %1 : vector<16x128xf32>
    %25 = arith.addf %18, %24 : vector<16x128xf32>
    %26 = arith.addf %25, %21 : vector<16x128xf32>
    %c1_i32_8 = arith.constant 1 : i32
    %27 = tpu.dynamic_rotate %22 by %c1_i32_8 dim 0 : vector<16x128xf32>, i32 -> vector<16x128xf32>
    %cst_9 = arith.constant 0.000000e+00 : f32
    %28 = vector.broadcast %cst_9 : f32 to vector<16x128xf32>
    %29 = arith.select %9, %28, %27 : vector<16x128xi1>, vector<16x128xf32>
    %cst_10 = arith.constant 2.000000e+00 : f32
    %30 = vector.broadcast %cst_10 : f32 to vector<16x128xf32>
    %31 = arith.mulf %30, %22 : vector<16x128xf32>
    %32 = arith.addf %29, %31 : vector<16x128xf32>
    %c15_i32_11 = arith.constant 15 : i32
    %33 = tpu.dynamic_rotate %22 by %c15_i32_11 dim 0 : vector<16x128xf32>, i32 -> vector<16x128xf32>
    %cst_12 = arith.constant 0.000000e+00 : f32
    %34 = vector.broadcast %cst_12 : f32 to vector<16x128xf32>
    %35 = arith.select %11, %34, %33 : vector<16x128xi1>, vector<16x128xf32>
    %36 = arith.addf %32, %35 : vector<16x128xf32>
    %c1_i32_13 = arith.constant 1 : i32
    %37 = tpu.dynamic_rotate %26 by %c1_i32_13 dim 0 : vector<16x128xf32>, i32 -> vector<16x128xf32>
    %cst_14 = arith.constant 0.000000e+00 : f32
    %38 = vector.broadcast %cst_14 : f32 to vector<16x128xf32>
    %39 = arith.select %9, %38, %37 : vector<16x128xi1>, vector<16x128xf32>
    %c15_i32_15 = arith.constant 15 : i32
    %40 = tpu.dynamic_rotate %26 by %c15_i32_15 dim 0 : vector<16x128xf32>, i32 -> vector<16x128xf32>
    %cst_16 = arith.constant 0.000000e+00 : f32
    %41 = vector.broadcast %cst_16 : f32 to vector<16x128xf32>
    %42 = arith.select %11, %41, %40 : vector<16x128xi1>, vector<16x128xf32>
    %43 = arith.subf %39, %42 : vector<16x128xf32>
    %44 = arith.mulf %36, %36 : vector<16x128xf32>
    %45 = arith.mulf %43, %43 : vector<16x128xf32>
    %46 = arith.addf %44, %45 : vector<16x128xf32>
    %47 = math.sqrt %46 : vector<16x128xf32>
    %cst_17 = arith.constant 1.000000e+00 : f32
    %48 = vector.broadcast %cst_17 : f32 to vector<16x128xf32>
    %49 = arith.subf %48, %47 : vector<16x128xf32>
    %50 = math.absf %43 : vector<16x128xf32>
    %51 = math.absf %36 : vector<16x128xf32>
    %52 = arith.maximumf %50, %51 : vector<16x128xf32>
    %53 = arith.minimumf %50, %51 : vector<16x128xf32>
    %cst_18 = arith.constant 9.99999991E-38 : f32
    %54 = vector.broadcast %cst_18 : f32 to vector<16x128xf32>
    %55 = arith.maximumf %52, %54 : vector<16x128xf32>
    %56 = arith.divf %53, %55 : vector<16x128xf32>
    %cst_19 = arith.constant 0.414213568 : f32
    %57 = vector.broadcast %cst_19 : f32 to vector<16x128xf32>
    %58 = arith.cmpf ogt, %56, %57 : vector<16x128xf32>
    %cst_20 = arith.constant 1.000000e+00 : f32
    %59 = vector.broadcast %cst_20 : f32 to vector<16x128xf32>
    %60 = arith.subf %56, %59 : vector<16x128xf32>
    %cst_21 = arith.constant 1.000000e+00 : f32
    %61 = vector.broadcast %cst_21 : f32 to vector<16x128xf32>
    %62 = arith.addf %56, %61 : vector<16x128xf32>
    %63 = arith.divf %60, %62 : vector<16x128xf32>
    %64 = arith.select %58, %63, %56 : vector<16x128xi1>, vector<16x128xf32>
    %65 = arith.mulf %64, %64 : vector<16x128xf32>
    %cst_22 = arith.constant 0.0805374458 : f32
    %66 = vector.broadcast %cst_22 : f32 to vector<16x128xf32>
    %67 = arith.mulf %66, %65 : vector<16x128xf32>
    %cst_23 = arith.constant 0.138776854 : f32
    %68 = vector.broadcast %cst_23 : f32 to vector<16x128xf32>
    %69 = arith.subf %67, %68 : vector<16x128xf32>
    %70 = arith.mulf %69, %65 : vector<16x128xf32>
    %cst_24 = arith.constant 0.199777111 : f32
    %71 = vector.broadcast %cst_24 : f32 to vector<16x128xf32>
    %72 = arith.addf %70, %71 : vector<16x128xf32>
    %73 = arith.mulf %72, %65 : vector<16x128xf32>
    %cst_25 = arith.constant 0.333329499 : f32
    %74 = vector.broadcast %cst_25 : f32 to vector<16x128xf32>
    %75 = arith.subf %73, %74 : vector<16x128xf32>
    %76 = arith.mulf %75, %65 : vector<16x128xf32>
    %77 = arith.mulf %76, %64 : vector<16x128xf32>
    %78 = arith.addf %77, %64 : vector<16x128xf32>
    %cst_26 = arith.constant 0.785398185 : f32
    %79 = vector.broadcast %cst_26 : f32 to vector<16x128xf32>
    %80 = arith.addf %78, %79 : vector<16x128xf32>
    %81 = arith.select %58, %80, %78 : vector<16x128xi1>, vector<16x128xf32>
    %82 = arith.cmpf ogt, %51, %50 : vector<16x128xf32>
    %cst_27 = arith.constant 1.57079637 : f32
    %83 = vector.broadcast %cst_27 : f32 to vector<16x128xf32>
    %84 = arith.subf %83, %81 : vector<16x128xf32>
    %85 = arith.select %82, %84, %81 : vector<16x128xi1>, vector<16x128xf32>
    %cst_28 = arith.constant 0.000000e+00 : f32
    %86 = vector.broadcast %cst_28 : f32 to vector<16x128xf32>
    %87 = arith.cmpf olt, %43, %86 : vector<16x128xf32>
    %cst_29 = arith.constant 3.14159274 : f32
    %88 = vector.broadcast %cst_29 : f32 to vector<16x128xf32>
    %89 = arith.subf %88, %85 : vector<16x128xf32>
    %90 = arith.select %87, %89, %85 : vector<16x128xi1>, vector<16x128xf32>
    %cst_30 = arith.constant 0.000000e+00 : f32
    %91 = vector.broadcast %cst_30 : f32 to vector<16x128xf32>
    %92 = arith.cmpf olt, %36, %91 : vector<16x128xf32>
    %cst_31 = arith.constant 0.000000e+00 : f32
    %93 = vector.broadcast %cst_31 : f32 to vector<16x128xf32>
    %94 = arith.subf %93, %90 : vector<16x128xf32>
    %95 = arith.select %92, %94, %90 : vector<16x128xi1>, vector<16x128xf32>
    %cst_32 = arith.constant 3.18309879 : f32
    %96 = vector.broadcast %cst_32 : f32 to vector<16x128xf32>
    %97 = arith.mulf %95, %96 : vector<16x128xf32>
    %98 = math.floor %97 : vector<16x128xf32>
    %99 = arith.cmpf one, %97, %98 : vector<16x128xf32>
    %100 = arith.extui %99 : vector<16x128xi1> to vector<16x128xi32>
    %101 = arith.sitofp %100 : vector<16x128xi32> to vector<16x128xf32>
    %102 = arith.addf %98, %101 : vector<16x128xf32>
    %cst_33 = arith.constant 0.000000e+00 : f32
    %103 = vector.broadcast %cst_33 : f32 to vector<16x128xf32>
    %104 = arith.cmpf olt, %98, %103 : vector<16x128xf32>
    %cst_34 = arith.constant 1.000000e+01 : f32
    %105 = vector.broadcast %cst_34 : f32 to vector<16x128xf32>
    %106 = arith.addf %98, %105 : vector<16x128xf32>
    %107 = arith.select %104, %106, %98 : vector<16x128xi1>, vector<16x128xf32>
    %cst_35 = arith.constant 0.000000e+00 : f32
    %108 = vector.broadcast %cst_35 : f32 to vector<16x128xf32>
    %109 = arith.cmpf olt, %102, %108 : vector<16x128xf32>
    %cst_36 = arith.constant 1.000000e+01 : f32
    %110 = vector.broadcast %cst_36 : f32 to vector<16x128xf32>
    %111 = arith.addf %102, %110 : vector<16x128xf32>
    %112 = arith.select %109, %111, %102 : vector<16x128xi1>, vector<16x128xf32>
    %c0_37 = arith.constant 0 : index
    %c0_38 = arith.constant 0 : index
    %113 = vector.load %arg2[%c0_37, %c0_38] : memref<128x16xf32, #tpu.memory_space<vmem>>, vector<128x16xf32>
    %c0_39 = arith.constant 0 : index
    %c0_40 = arith.constant 0 : index
    %114 = vector.load %arg3[%c0_39, %c0_40] : memref<2x16xf32, #tpu.memory_space<vmem>>, vector<2x16xf32>
    %c0_41 = arith.constant 0 : index
    %c0_42 = arith.constant 0 : index
    %115 = vector.load %arg4[%c0_41, %c0_42] : memref<16x16xf32, #tpu.memory_space<vmem>>, vector<16x16xf32>
    %c0_43 = arith.constant 0 : index
    %c0_44 = arith.constant 0 : index
    %116 = vector.load %arg5[%c0_43, %c0_44] : memref<2x2xf32, #tpu.memory_space<vmem>>, vector<2x2xf32>
    %cst_45 = arith.constant 0.000000e+00 : f32
    %117 = vector.broadcast %cst_45 : f32 to vector<16x128xf32>
    %118 = arith.cmpf oeq, %107, %117 : vector<16x128xf32>
    %cst_46 = arith.constant 0.000000e+00 : f32
    %119 = vector.broadcast %cst_46 : f32 to vector<16x128xf32>
    %120 = arith.cmpf oeq, %112, %119 : vector<16x128xf32>
    %cst_47 = arith.constant 1.000000e+01 : f32
    %121 = vector.broadcast %cst_47 : f32 to vector<16x128xf32>
    %122 = arith.cmpf oeq, %107, %121 : vector<16x128xf32>
    %123 = arith.ori %118, %122 : vector<16x128xi1>
    %cst_48 = arith.constant 1.000000e+01 : f32
    %124 = vector.broadcast %cst_48 : f32 to vector<16x128xf32>
    %125 = arith.cmpf oeq, %112, %124 : vector<16x128xf32>
    %126 = arith.ori %120, %125 : vector<16x128xi1>
    %cst_49 = arith.constant 0.000000e+00 : f32
    %127 = vector.broadcast %cst_49 : f32 to vector<16x128xf32>
    %128 = arith.select %123, %47, %127 : vector<16x128xi1>, vector<16x128xf32>
    %cst_50 = arith.constant 0.000000e+00 : f32
    %129 = vector.broadcast %cst_50 : f32 to vector<16x128xf32>
    %130 = arith.select %126, %49, %129 : vector<16x128xi1>, vector<16x128xf32>
    %131 = arith.addf %128, %130 : vector<16x128xf32>
    %cst_51 = arith.constant dense<0.000000e+00> : vector<16x16xf32>
    %132 = tpu.matmul %131, %113, %cst_51 {dimension_numbers = #tpu.dot_dimension_numbers<[1], [0], [0], [1], [0, 0, 1, 1], [], []>} : vector<16x128xf32>, vector<128x16xf32>, vector<16x16xf32> -> vector<16x16xf32>
    %cst_52 = arith.constant dense<0.000000e+00> : vector<2x16xf32>
    %133 = tpu.matmul %114, %132, %cst_52 {dimension_numbers = #tpu.dot_dimension_numbers<[1], [0], [0], [1], [0, 0, 1, 1], [], []>} : vector<2x16xf32>, vector<16x16xf32>, vector<2x16xf32> -> vector<2x16xf32>
    %134 = arith.mulf %133, %133 : vector<2x16xf32>
    %cst_53 = arith.constant dense<0.000000e+00> : vector<2x16xf32>
    %135 = tpu.matmul %134, %115, %cst_53 {dimension_numbers = #tpu.dot_dimension_numbers<[1], [0], [0], [1], [0, 0, 1, 1], [], []>} : vector<2x16xf32>, vector<16x16xf32>, vector<2x16xf32> -> vector<2x16xf32>
    %cst_54 = arith.constant dense<0.000000e+00> : vector<2x16xf32>
    %136 = tpu.matmul %116, %135, %cst_54 {dimension_numbers = #tpu.dot_dimension_numbers<[1], [0], [0], [1], [0, 0, 1, 1], [], []>} : vector<2x2xf32>, vector<2x16xf32>, vector<2x16xf32> -> vector<2x16xf32>
    %cst_55 = arith.constant 1.000000e-24 : f32
    %137 = vector.broadcast %cst_55 : f32 to vector<2x16xf32>
    %138 = arith.maximumf %136, %137 : vector<2x16xf32>
    %139 = math.rsqrt %138 : vector<2x16xf32>
    %140 = arith.mulf %133, %139 : vector<2x16xf32>
    %c0_56 = arith.constant 0 : index
    %c0_57 = arith.constant 0 : index
    %c0_58 = arith.constant 0 : index
    %141 = vector.load %arg6[%c0_56, %c0_57, %c0_58] : memref<1x2x160xf32, #tpu.memory_space<vmem>>, vector<1x2x16xf32>
    %142 = vector.shape_cast %141 : vector<1x2x16xf32> to vector<2x16xf32>
    %143 = vector.shape_cast %140 : vector<2x16xf32> to vector<1x2x16xf32>
    tpu.vector_store %arg6[%c0_56, %c0_57, %c0_58], %143 {strides = array<i32>} : memref<1x2x160xf32, #tpu.memory_space<vmem>>, vector<1x2x16xf32>,
    %cst_59 = arith.constant 1.000000e+00 : f32
    %144 = vector.broadcast %cst_59 : f32 to vector<16x128xf32>
    %145 = arith.cmpf oeq, %107, %144 : vector<16x128xf32>
    %cst_60 = arith.constant 1.000000e+00 : f32
    %146 = vector.broadcast %cst_60 : f32 to vector<16x128xf32>
    %147 = arith.cmpf oeq, %112, %146 : vector<16x128xf32>
    %cst_61 = arith.constant 0.000000e+00 : f32
    %148 = vector.broadcast %cst_61 : f32 to vector<16x128xf32>
    %149 = arith.select %145, %47, %148 : vector<16x128xi1>, vector<16x128xf32>
    %cst_62 = arith.constant 0.000000e+00 : f32
    %150 = vector.broadcast %cst_62 : f32 to vector<16x128xf32>
    %151 = arith.select %147, %49, %150 : vector<16x128xi1>, vector<16x128xf32>
    %152 = arith.addf %149, %151 : vector<16x128xf32>
    %cst_63 = arith.constant dense<0.000000e+00> : vector<16x16xf32>
    %153 = tpu.matmul %152, %113, %cst_63 {dimension_numbers = #tpu.dot_dimension_numbers<[1], [0], [0], [1], [0, 0, 1, 1], [], []>} : vector<16x128xf32>, vector<128x16xf32>, vector<16x16xf32> -> vector<16x16xf32>
    %cst_64 = arith.constant dense<0.000000e+00> : vector<2x16xf32>
    %154 = tpu.matmul %114, %153, %cst_64 {dimension_numbers = #tpu.dot_dimension_numbers<[1], [0], [0], [1], [0, 0, 1, 1], [], []>} : vector<2x16xf32>, vector<16x16xf32>, vector<2x16xf32> -> vector<2x16xf32>
    %155 = arith.mulf %154, %154 : vector<2x16xf32>
    %cst_65 = arith.constant dense<0.000000e+00> : vector<2x16xf32>
    %156 = tpu.matmul %155, %115, %cst_65 {dimension_numbers = #tpu.dot_dimension_numbers<[1], [0], [0], [1], [0, 0, 1, 1], [], []>} : vector<2x16xf32>, vector<16x16xf32>, vector<2x16xf32> -> vector<2x16xf32>
    %cst_66 = arith.constant dense<0.000000e+00> : vector<2x16xf32>
    %157 = tpu.matmul %116, %156, %cst_66 {dimension_numbers = #tpu.dot_dimension_numbers<[1], [0], [0], [1], [0, 0, 1, 1], [], []>} : vector<2x2xf32>, vector<2x16xf32>, vector<2x16xf32> -> vector<2x16xf32>
    %cst_67 = arith.constant 1.000000e-24 : f32
    %158 = vector.broadcast %cst_67 : f32 to vector<2x16xf32>
    %159 = arith.maximumf %157, %158 : vector<2x16xf32>
    %160 = math.rsqrt %159 : vector<2x16xf32>
    %161 = arith.mulf %154, %160 : vector<2x16xf32>
    %c0_68 = arith.constant 0 : index
    %c0_69 = arith.constant 0 : index
    %c16 = arith.constant 16 : index
    %162 = vector.load %arg6[%c0_68, %c0_69, %c16] : memref<1x2x160xf32, #tpu.memory_space<vmem>>, vector<1x2x16xf32>
    %163 = vector.shape_cast %162 : vector<1x2x16xf32> to vector<2x16xf32>
    %164 = vector.shape_cast %161 : vector<2x16xf32> to vector<1x2x16xf32>
    tpu.vector_store %arg6[%c0_68, %c0_69, %c16], %164 {strides = array<i32>} : memref<1x2x160xf32, #tpu.memory_space<vmem>>, vector<1x2x16xf32>,
    %cst_70 = arith.constant 2.000000e+00 : f32
    %165 = vector.broadcast %cst_70 : f32 to vector<16x128xf32>
    %166 = arith.cmpf oeq, %107, %165 : vector<16x128xf32>
    %cst_71 = arith.constant 2.000000e+00 : f32
    %167 = vector.broadcast %cst_71 : f32 to vector<16x128xf32>
    %168 = arith.cmpf oeq, %112, %167 : vector<16x128xf32>
    %cst_72 = arith.constant 0.000000e+00 : f32
    %169 = vector.broadcast %cst_72 : f32 to vector<16x128xf32>
    %170 = arith.select %166, %47, %169 : vector<16x128xi1>, vector<16x128xf32>
    %cst_73 = arith.constant 0.000000e+00 : f32
    %171 = vector.broadcast %cst_73 : f32 to vector<16x128xf32>
    %172 = arith.select %168, %49, %171 : vector<16x128xi1>, vector<16x128xf32>
    %173 = arith.addf %170, %172 : vector<16x128xf32>
    %cst_74 = arith.constant dense<0.000000e+00> : vector<16x16xf32>
    %174 = tpu.matmul %173, %113, %cst_74 {dimension_numbers = #tpu.dot_dimension_numbers<[1], [0], [0], [1], [0, 0, 1, 1], [], []>} : vector<16x128xf32>, vector<128x16xf32>, vector<16x16xf32> -> vector<16x16xf32>
    %cst_75 = arith.constant dense<0.000000e+00> : vector<2x16xf32>
    %175 = tpu.matmul %114, %174, %cst_75 {dimension_numbers = #tpu.dot_dimension_numbers<[1], [0], [0], [1], [0, 0, 1, 1], [], []>} : vector<2x16xf32>, vector<16x16xf32>, vector<2x16xf32> -> vector<2x16xf32>
    %176 = arith.mulf %175, %175 : vector<2x16xf32>
    %cst_76 = arith.constant dense<0.000000e+00> : vector<2x16xf32>
    %177 = tpu.matmul %176, %115, %cst_76 {dimension_numbers = #tpu.dot_dimension_numbers<[1], [0], [0], [1], [0, 0, 1, 1], [], []>} : vector<2x16xf32>, vector<16x16xf32>, vector<2x16xf32> -> vector<2x16xf32>
    %cst_77 = arith.constant dense<0.000000e+00> : vector<2x16xf32>
    %178 = tpu.matmul %116, %177, %cst_77 {dimension_numbers = #tpu.dot_dimension_numbers<[1], [0], [0], [1], [0, 0, 1, 1], [], []>} : vector<2x2xf32>, vector<2x16xf32>, vector<2x16xf32> -> vector<2x16xf32>
    %cst_78 = arith.constant 1.000000e-24 : f32
    %179 = vector.broadcast %cst_78 : f32 to vector<2x16xf32>
    %180 = arith.maximumf %178, %179 : vector<2x16xf32>
    %181 = math.rsqrt %180 : vector<2x16xf32>
    %182 = arith.mulf %175, %181 : vector<2x16xf32>
    %c0_79 = arith.constant 0 : index
    %c0_80 = arith.constant 0 : index
    %c32 = arith.constant 32 : index
    %183 = vector.load %arg6[%c0_79, %c0_80, %c32] : memref<1x2x160xf32, #tpu.memory_space<vmem>>, vector<1x2x16xf32>
    %184 = vector.shape_cast %183 : vector<1x2x16xf32> to vector<2x16xf32>
    %185 = vector.shape_cast %182 : vector<2x16xf32> to vector<1x2x16xf32>
    tpu.vector_store %arg6[%c0_79, %c0_80, %c32], %185 {strides = array<i32>} : memref<1x2x160xf32, #tpu.memory_space<vmem>>, vector<1x2x16xf32>,
    %cst_81 = arith.constant 3.000000e+00 : f32
    %186 = vector.broadcast %cst_81 : f32 to vector<16x128xf32>
    %187 = arith.cmpf oeq, %107, %186 : vector<16x128xf32>
    %cst_82 = arith.constant 3.000000e+00 : f32
    %188 = vector.broadcast %cst_82 : f32 to vector<16x128xf32>
    %189 = arith.cmpf oeq, %112, %188 : vector<16x128xf32>
    %cst_83 = arith.constant 0.000000e+00 : f32
    %190 = vector.broadcast %cst_83 : f32 to vector<16x128xf32>
    %191 = arith.select %187, %47, %190 : vector<16x128xi1>, vector<16x128xf32>
    %cst_84 = arith.constant 0.000000e+00 : f32
    %192 = vector.broadcast %cst_84 : f32 to vector<16x128xf32>
    %193 = arith.select %189, %49, %192 : vector<16x128xi1>, vector<16x128xf32>
    %194 = arith.addf %191, %193 : vector<16x128xf32>
    %cst_85 = arith.constant dense<0.000000e+00> : vector<16x16xf32>
    %195 = tpu.matmul %194, %113, %cst_85 {dimension_numbers = #tpu.dot_dimension_numbers<[1], [0], [0], [1], [0, 0, 1, 1], [], []>} : vector<16x128xf32>, vector<128x16xf32>, vector<16x16xf32> -> vector<16x16xf32>
    %cst_86 = arith.constant dense<0.000000e+00> : vector<2x16xf32>
    %196 = tpu.matmul %114, %195, %cst_86 {dimension_numbers = #tpu.dot_dimension_numbers<[1], [0], [0], [1], [0, 0, 1, 1], [], []>} : vector<2x16xf32>, vector<16x16xf32>, vector<2x16xf32> -> vector<2x16xf32>
    %197 = arith.mulf %196, %196 : vector<2x16xf32>
    %cst_87 = arith.constant dense<0.000000e+00> : vector<2x16xf32>
    %198 = tpu.matmul %197, %115, %cst_87 {dimension_numbers = #tpu.dot_dimension_numbers<[1], [0], [0], [1], [0, 0, 1, 1], [], []>} : vector<2x16xf32>, vector<16x16xf32>, vector<2x16xf32> -> vector<2x16xf32>
    %cst_88 = arith.constant dense<0.000000e+00> : vector<2x16xf32>
    %199 = tpu.matmul %116, %198, %cst_88 {dimension_numbers = #tpu.dot_dimension_numbers<[1], [0], [0], [1], [0, 0, 1, 1], [], []>} : vector<2x2xf32>, vector<2x16xf32>, vector<2x16xf32> -> vector<2x16xf32>
    %cst_89 = arith.constant 1.000000e-24 : f32
    %200 = vector.broadcast %cst_89 : f32 to vector<2x16xf32>
    %201 = arith.maximumf %199, %200 : vector<2x16xf32>
    %202 = math.rsqrt %201 : vector<2x16xf32>
    %203 = arith.mulf %196, %202 : vector<2x16xf32>
    %c0_90 = arith.constant 0 : index
    %c0_91 = arith.constant 0 : index
    %c48 = arith.constant 48 : index
    %204 = vector.load %arg6[%c0_90, %c0_91, %c48] : memref<1x2x160xf32, #tpu.memory_space<vmem>>, vector<1x2x16xf32>
    %205 = vector.shape_cast %204 : vector<1x2x16xf32> to vector<2x16xf32>
    %206 = vector.shape_cast %203 : vector<2x16xf32> to vector<1x2x16xf32>
    tpu.vector_store %arg6[%c0_90, %c0_91, %c48], %206 {strides = array<i32>} : memref<1x2x160xf32, #tpu.memory_space<vmem>>, vector<1x2x16xf32>,
    %cst_92 = arith.constant 4.000000e+00 : f32
    %207 = vector.broadcast %cst_92 : f32 to vector<16x128xf32>
    %208 = arith.cmpf oeq, %107, %207 : vector<16x128xf32>
    %cst_93 = arith.constant 4.000000e+00 : f32
    %209 = vector.broadcast %cst_93 : f32 to vector<16x128xf32>
    %210 = arith.cmpf oeq, %112, %209 : vector<16x128xf32>
    %cst_94 = arith.constant 0.000000e+00 : f32
    %211 = vector.broadcast %cst_94 : f32 to vector<16x128xf32>
    %212 = arith.select %208, %47, %211 : vector<16x128xi1>, vector<16x128xf32>
    %cst_95 = arith.constant 0.000000e+00 : f32
    %213 = vector.broadcast %cst_95 : f32 to vector<16x128xf32>
    %214 = arith.select %210, %49, %213 : vector<16x128xi1>, vector<16x128xf32>
    %215 = arith.addf %212, %214 : vector<16x128xf32>
    %cst_96 = arith.constant dense<0.000000e+00> : vector<16x16xf32>
    %216 = tpu.matmul %215, %113, %cst_96 {dimension_numbers = #tpu.dot_dimension_numbers<[1], [0], [0], [1], [0, 0, 1, 1], [], []>} : vector<16x128xf32>, vector<128x16xf32>, vector<16x16xf32> -> vector<16x16xf32>
    %cst_97 = arith.constant dense<0.000000e+00> : vector<2x16xf32>
    %217 = tpu.matmul %114, %216, %cst_97 {dimension_numbers = #tpu.dot_dimension_numbers<[1], [0], [0], [1], [0, 0, 1, 1], [], []>} : vector<2x16xf32>, vector<16x16xf32>, vector<2x16xf32> -> vector<2x16xf32>
    %218 = arith.mulf %217, %217 : vector<2x16xf32>
    %cst_98 = arith.constant dense<0.000000e+00> : vector<2x16xf32>
    %219 = tpu.matmul %218, %115, %cst_98 {dimension_numbers = #tpu.dot_dimension_numbers<[1], [0], [0], [1], [0, 0, 1, 1], [], []>} : vector<2x16xf32>, vector<16x16xf32>, vector<2x16xf32> -> vector<2x16xf32>
    %cst_99 = arith.constant dense<0.000000e+00> : vector<2x16xf32>
    %220 = tpu.matmul %116, %219, %cst_99 {dimension_numbers = #tpu.dot_dimension_numbers<[1], [0], [0], [1], [0, 0, 1, 1], [], []>} : vector<2x2xf32>, vector<2x16xf32>, vector<2x16xf32> -> vector<2x16xf32>
    %cst_100 = arith.constant 1.000000e-24 : f32
    %221 = vector.broadcast %cst_100 : f32 to vector<2x16xf32>
    %222 = arith.maximumf %220, %221 : vector<2x16xf32>
    %223 = math.rsqrt %222 : vector<2x16xf32>
    %224 = arith.mulf %217, %223 : vector<2x16xf32>
    %c0_101 = arith.constant 0 : index
    %c0_102 = arith.constant 0 : index
    %c64 = arith.constant 64 : index
    %225 = vector.load %arg6[%c0_101, %c0_102, %c64] : memref<1x2x160xf32, #tpu.memory_space<vmem>>, vector<1x2x16xf32>
    %226 = vector.shape_cast %225 : vector<1x2x16xf32> to vector<2x16xf32>
    %227 = vector.shape_cast %224 : vector<2x16xf32> to vector<1x2x16xf32>
    tpu.vector_store %arg6[%c0_101, %c0_102, %c64], %227 {strides = array<i32>} : memref<1x2x160xf32, #tpu.memory_space<vmem>>, vector<1x2x16xf32>,
    %cst_103 = arith.constant 5.000000e+00 : f32
    %228 = vector.broadcast %cst_103 : f32 to vector<16x128xf32>
    %229 = arith.cmpf oeq, %107, %228 : vector<16x128xf32>
    %cst_104 = arith.constant 5.000000e+00 : f32
    %230 = vector.broadcast %cst_104 : f32 to vector<16x128xf32>
    %231 = arith.cmpf oeq, %112, %230 : vector<16x128xf32>
    %cst_105 = arith.constant 0.000000e+00 : f32
    %232 = vector.broadcast %cst_105 : f32 to vector<16x128xf32>
    %233 = arith.select %229, %47, %232 : vector<16x128xi1>, vector<16x128xf32>
    %cst_106 = arith.constant 0.000000e+00 : f32
    %234 = vector.broadcast %cst_106 : f32 to vector<16x128xf32>
    %235 = arith.select %231, %49, %234 : vector<16x128xi1>, vector<16x128xf32>
    %236 = arith.addf %233, %235 : vector<16x128xf32>
    %cst_107 = arith.constant dense<0.000000e+00> : vector<16x16xf32>
    %237 = tpu.matmul %236, %113, %cst_107 {dimension_numbers = #tpu.dot_dimension_numbers<[1], [0], [0], [1], [0, 0, 1, 1], [], []>} : vector<16x128xf32>, vector<128x16xf32>, vector<16x16xf32> -> vector<16x16xf32>
    %cst_108 = arith.constant dense<0.000000e+00> : vector<2x16xf32>
    %238 = tpu.matmul %114, %237, %cst_108 {dimension_numbers = #tpu.dot_dimension_numbers<[1], [0], [0], [1], [0, 0, 1, 1], [], []>} : vector<2x16xf32>, vector<16x16xf32>, vector<2x16xf32> -> vector<2x16xf32>
    %239 = arith.mulf %238, %238 : vector<2x16xf32>
    %cst_109 = arith.constant dense<0.000000e+00> : vector<2x16xf32>
    %240 = tpu.matmul %239, %115, %cst_109 {dimension_numbers = #tpu.dot_dimension_numbers<[1], [0], [0], [1], [0, 0, 1, 1], [], []>} : vector<2x16xf32>, vector<16x16xf32>, vector<2x16xf32> -> vector<2x16xf32>
    %cst_110 = arith.constant dense<0.000000e+00> : vector<2x16xf32>
    %241 = tpu.matmul %116, %240, %cst_110 {dimension_numbers = #tpu.dot_dimension_numbers<[1], [0], [0], [1], [0, 0, 1, 1], [], []>} : vector<2x2xf32>, vector<2x16xf32>, vector<2x16xf32> -> vector<2x16xf32>
    %cst_111 = arith.constant 1.000000e-24 : f32
    %242 = vector.broadcast %cst_111 : f32 to vector<2x16xf32>
    %243 = arith.maximumf %241, %242 : vector<2x16xf32>
    %244 = math.rsqrt %243 : vector<2x16xf32>
    %245 = arith.mulf %238, %244 : vector<2x16xf32>
    %c0_112 = arith.constant 0 : index
    %c0_113 = arith.constant 0 : index
    %c80 = arith.constant 80 : index
    %246 = vector.load %arg6[%c0_112, %c0_113, %c80] : memref<1x2x160xf32, #tpu.memory_space<vmem>>, vector<1x2x16xf32>
    %247 = vector.shape_cast %246 : vector<1x2x16xf32> to vector<2x16xf32>
    %248 = vector.shape_cast %245 : vector<2x16xf32> to vector<1x2x16xf32>
    tpu.vector_store %arg6[%c0_112, %c0_113, %c80], %248 {strides = array<i32>} : memref<1x2x160xf32, #tpu.memory_space<vmem>>, vector<1x2x16xf32>,
    %cst_114 = arith.constant 6.000000e+00 : f32
    %249 = vector.broadcast %cst_114 : f32 to vector<16x128xf32>
    %250 = arith.cmpf oeq, %107, %249 : vector<16x128xf32>
    %cst_115 = arith.constant 6.000000e+00 : f32
    %251 = vector.broadcast %cst_115 : f32 to vector<16x128xf32>
    %252 = arith.cmpf oeq, %112, %251 : vector<16x128xf32>
    %cst_116 = arith.constant 0.000000e+00 : f32
    %253 = vector.broadcast %cst_116 : f32 to vector<16x128xf32>
    %254 = arith.select %250, %47, %253 : vector<16x128xi1>, vector<16x128xf32>
    %cst_117 = arith.constant 0.000000e+00 : f32
    %255 = vector.broadcast %cst_117 : f32 to vector<16x128xf32>
    %256 = arith.select %252, %49, %255 : vector<16x128xi1>, vector<16x128xf32>
    %257 = arith.addf %254, %256 : vector<16x128xf32>
    %cst_118 = arith.constant dense<0.000000e+00> : vector<16x16xf32>
    %258 = tpu.matmul %257, %113, %cst_118 {dimension_numbers = #tpu.dot_dimension_numbers<[1], [0], [0], [1], [0, 0, 1, 1], [], []>} : vector<16x128xf32>, vector<128x16xf32>, vector<16x16xf32> -> vector<16x16xf32>
    %cst_119 = arith.constant dense<0.000000e+00> : vector<2x16xf32>
    %259 = tpu.matmul %114, %258, %cst_119 {dimension_numbers = #tpu.dot_dimension_numbers<[1], [0], [0], [1], [0, 0, 1, 1], [], []>} : vector<2x16xf32>, vector<16x16xf32>, vector<2x16xf32> -> vector<2x16xf32>
    %260 = arith.mulf %259, %259 : vector<2x16xf32>
    %cst_120 = arith.constant dense<0.000000e+00> : vector<2x16xf32>
    %261 = tpu.matmul %260, %115, %cst_120 {dimension_numbers = #tpu.dot_dimension_numbers<[1], [0], [0], [1], [0, 0, 1, 1], [], []>} : vector<2x16xf32>, vector<16x16xf32>, vector<2x16xf32> -> vector<2x16xf32>
    %cst_121 = arith.constant dense<0.000000e+00> : vector<2x16xf32>
    %262 = tpu.matmul %116, %261, %cst_121 {dimension_numbers = #tpu.dot_dimension_numbers<[1], [0], [0], [1], [0, 0, 1, 1], [], []>} : vector<2x2xf32>, vector<2x16xf32>, vector<2x16xf32> -> vector<2x16xf32>
    %cst_122 = arith.constant 1.000000e-24 : f32
    %263 = vector.broadcast %cst_122 : f32 to vector<2x16xf32>
    %264 = arith.maximumf %262, %263 : vector<2x16xf32>
    %265 = math.rsqrt %264 : vector<2x16xf32>
    %266 = arith.mulf %259, %265 : vector<2x16xf32>
    %c0_123 = arith.constant 0 : index
    %c0_124 = arith.constant 0 : index
    %c96 = arith.constant 96 : index
    %267 = vector.load %arg6[%c0_123, %c0_124, %c96] : memref<1x2x160xf32, #tpu.memory_space<vmem>>, vector<1x2x16xf32>
    %268 = vector.shape_cast %267 : vector<1x2x16xf32> to vector<2x16xf32>
    %269 = vector.shape_cast %266 : vector<2x16xf32> to vector<1x2x16xf32>
    tpu.vector_store %arg6[%c0_123, %c0_124, %c96], %269 {strides = array<i32>} : memref<1x2x160xf32, #tpu.memory_space<vmem>>, vector<1x2x16xf32>,
    %cst_125 = arith.constant 7.000000e+00 : f32
    %270 = vector.broadcast %cst_125 : f32 to vector<16x128xf32>
    %271 = arith.cmpf oeq, %107, %270 : vector<16x128xf32>
    %cst_126 = arith.constant 7.000000e+00 : f32
    %272 = vector.broadcast %cst_126 : f32 to vector<16x128xf32>
    %273 = arith.cmpf oeq, %112, %272 : vector<16x128xf32>
    %cst_127 = arith.constant 0.000000e+00 : f32
    %274 = vector.broadcast %cst_127 : f32 to vector<16x128xf32>
    %275 = arith.select %271, %47, %274 : vector<16x128xi1>, vector<16x128xf32>
    %cst_128 = arith.constant 0.000000e+00 : f32
    %276 = vector.broadcast %cst_128 : f32 to vector<16x128xf32>
    %277 = arith.select %273, %49, %276 : vector<16x128xi1>, vector<16x128xf32>
    %278 = arith.addf %275, %277 : vector<16x128xf32>
    %cst_129 = arith.constant dense<0.000000e+00> : vector<16x16xf32>
    %279 = tpu.matmul %278, %113, %cst_129 {dimension_numbers = #tpu.dot_dimension_numbers<[1], [0], [0], [1], [0, 0, 1, 1], [], []>} : vector<16x128xf32>, vector<128x16xf32>, vector<16x16xf32> -> vector<16x16xf32>
    %cst_130 = arith.constant dense<0.000000e+00> : vector<2x16xf32>
    %280 = tpu.matmul %114, %279, %cst_130 {dimension_numbers = #tpu.dot_dimension_numbers<[1], [0], [0], [1], [0, 0, 1, 1], [], []>} : vector<2x16xf32>, vector<16x16xf32>, vector<2x16xf32> -> vector<2x16xf32>
    %281 = arith.mulf %280, %280 : vector<2x16xf32>
    %cst_131 = arith.constant dense<0.000000e+00> : vector<2x16xf32>
    %282 = tpu.matmul %281, %115, %cst_131 {dimension_numbers = #tpu.dot_dimension_numbers<[1], [0], [0], [1], [0, 0, 1, 1], [], []>} : vector<2x16xf32>, vector<16x16xf32>, vector<2x16xf32> -> vector<2x16xf32>
    %cst_132 = arith.constant dense<0.000000e+00> : vector<2x16xf32>
    %283 = tpu.matmul %116, %282, %cst_132 {dimension_numbers = #tpu.dot_dimension_numbers<[1], [0], [0], [1], [0, 0, 1, 1], [], []>} : vector<2x2xf32>, vector<2x16xf32>, vector<2x16xf32> -> vector<2x16xf32>
    %cst_133 = arith.constant 1.000000e-24 : f32
    %284 = vector.broadcast %cst_133 : f32 to vector<2x16xf32>
    %285 = arith.maximumf %283, %284 : vector<2x16xf32>
    %286 = math.rsqrt %285 : vector<2x16xf32>
    %287 = arith.mulf %280, %286 : vector<2x16xf32>
    %c0_134 = arith.constant 0 : index
    %c0_135 = arith.constant 0 : index
    %c112 = arith.constant 112 : index
    %288 = vector.load %arg6[%c0_134, %c0_135, %c112] : memref<1x2x160xf32, #tpu.memory_space<vmem>>, vector<1x2x16xf32>
    %289 = vector.shape_cast %288 : vector<1x2x16xf32> to vector<2x16xf32>
    %290 = vector.shape_cast %287 : vector<2x16xf32> to vector<1x2x16xf32>
    tpu.vector_store %arg6[%c0_134, %c0_135, %c112], %290 {strides = array<i32>} : memref<1x2x160xf32, #tpu.memory_space<vmem>>, vector<1x2x16xf32>,
    %cst_136 = arith.constant 8.000000e+00 : f32
    %291 = vector.broadcast %cst_136 : f32 to vector<16x128xf32>
    %292 = arith.cmpf oeq, %107, %291 : vector<16x128xf32>
    %cst_137 = arith.constant 8.000000e+00 : f32
    %293 = vector.broadcast %cst_137 : f32 to vector<16x128xf32>
    %294 = arith.cmpf oeq, %112, %293 : vector<16x128xf32>
    %cst_138 = arith.constant 0.000000e+00 : f32
    %295 = vector.broadcast %cst_138 : f32 to vector<16x128xf32>
    %296 = arith.select %292, %47, %295 : vector<16x128xi1>, vector<16x128xf32>
    %cst_139 = arith.constant 0.000000e+00 : f32
    %297 = vector.broadcast %cst_139 : f32 to vector<16x128xf32>
    %298 = arith.select %294, %49, %297 : vector<16x128xi1>, vector<16x128xf32>
    %299 = arith.addf %296, %298 : vector<16x128xf32>
    %cst_140 = arith.constant dense<0.000000e+00> : vector<16x16xf32>
    %300 = tpu.matmul %299, %113, %cst_140 {dimension_numbers = #tpu.dot_dimension_numbers<[1], [0], [0], [1], [0, 0, 1, 1], [], []>} : vector<16x128xf32>, vector<128x16xf32>, vector<16x16xf32> -> vector<16x16xf32>
    %cst_141 = arith.constant dense<0.000000e+00> : vector<2x16xf32>
    %301 = tpu.matmul %114, %300, %cst_141 {dimension_numbers = #tpu.dot_dimension_numbers<[1], [0], [0], [1], [0, 0, 1, 1], [], []>} : vector<2x16xf32>, vector<16x16xf32>, vector<2x16xf32> -> vector<2x16xf32>
    %302 = arith.mulf %301, %301 : vector<2x16xf32>
    %cst_142 = arith.constant dense<0.000000e+00> : vector<2x16xf32>
    %303 = tpu.matmul %302, %115, %cst_142 {dimension_numbers = #tpu.dot_dimension_numbers<[1], [0], [0], [1], [0, 0, 1, 1], [], []>} : vector<2x16xf32>, vector<16x16xf32>, vector<2x16xf32> -> vector<2x16xf32>
    %cst_143 = arith.constant dense<0.000000e+00> : vector<2x16xf32>
    %304 = tpu.matmul %116, %303, %cst_143 {dimension_numbers = #tpu.dot_dimension_numbers<[1], [0], [0], [1], [0, 0, 1, 1], [], []>} : vector<2x2xf32>, vector<2x16xf32>, vector<2x16xf32> -> vector<2x16xf32>
    %cst_144 = arith.constant 1.000000e-24 : f32
    %305 = vector.broadcast %cst_144 : f32 to vector<2x16xf32>
    %306 = arith.maximumf %304, %305 : vector<2x16xf32>
    %307 = math.rsqrt %306 : vector<2x16xf32>
    %308 = arith.mulf %301, %307 : vector<2x16xf32>
    %c0_145 = arith.constant 0 : index
    %c0_146 = arith.constant 0 : index
    %c128 = arith.constant 128 : index
    %309 = vector.load %arg6[%c0_145, %c0_146, %c128] : memref<1x2x160xf32, #tpu.memory_space<vmem>>, vector<1x2x16xf32>
    %310 = vector.shape_cast %309 : vector<1x2x16xf32> to vector<2x16xf32>
    %311 = vector.shape_cast %308 : vector<2x16xf32> to vector<1x2x16xf32>
    tpu.vector_store %arg6[%c0_145, %c0_146, %c128], %311 {strides = array<i32>} : memref<1x2x160xf32, #tpu.memory_space<vmem>>, vector<1x2x16xf32>,
    %cst_147 = arith.constant 9.000000e+00 : f32
    %312 = vector.broadcast %cst_147 : f32 to vector<16x128xf32>
    %313 = arith.cmpf oeq, %107, %312 : vector<16x128xf32>
    %cst_148 = arith.constant 9.000000e+00 : f32
    %314 = vector.broadcast %cst_148 : f32 to vector<16x128xf32>
    %315 = arith.cmpf oeq, %112, %314 : vector<16x128xf32>
    %cst_149 = arith.constant 0.000000e+00 : f32
    %316 = vector.broadcast %cst_149 : f32 to vector<16x128xf32>
    %317 = arith.select %313, %47, %316 : vector<16x128xi1>, vector<16x128xf32>
    %cst_150 = arith.constant 0.000000e+00 : f32
    %318 = vector.broadcast %cst_150 : f32 to vector<16x128xf32>
    %319 = arith.select %315, %49, %318 : vector<16x128xi1>, vector<16x128xf32>
    %320 = arith.addf %317, %319 : vector<16x128xf32>
    %cst_151 = arith.constant dense<0.000000e+00> : vector<16x16xf32>
    %321 = tpu.matmul %320, %113, %cst_151 {dimension_numbers = #tpu.dot_dimension_numbers<[1], [0], [0], [1], [0, 0, 1, 1], [], []>} : vector<16x128xf32>, vector<128x16xf32>, vector<16x16xf32> -> vector<16x16xf32>
    %cst_152 = arith.constant dense<0.000000e+00> : vector<2x16xf32>
    %322 = tpu.matmul %114, %321, %cst_152 {dimension_numbers = #tpu.dot_dimension_numbers<[1], [0], [0], [1], [0, 0, 1, 1], [], []>} : vector<2x16xf32>, vector<16x16xf32>, vector<2x16xf32> -> vector<2x16xf32>
    %323 = arith.mulf %322, %322 : vector<2x16xf32>
    %cst_153 = arith.constant dense<0.000000e+00> : vector<2x16xf32>
    %324 = tpu.matmul %323, %115, %cst_153 {dimension_numbers = #tpu.dot_dimension_numbers<[1], [0], [0], [1], [0, 0, 1, 1], [], []>} : vector<2x16xf32>, vector<16x16xf32>, vector<2x16xf32> -> vector<2x16xf32>
    %cst_154 = arith.constant dense<0.000000e+00> : vector<2x16xf32>
    %325 = tpu.matmul %116, %324, %cst_154 {dimension_numbers = #tpu.dot_dimension_numbers<[1], [0], [0], [1], [0, 0, 1, 1], [], []>} : vector<2x2xf32>, vector<2x16xf32>, vector<2x16xf32> -> vector<2x16xf32>
    %cst_155 = arith.constant 1.000000e-24 : f32
    %326 = vector.broadcast %cst_155 : f32 to vector<2x16xf32>
    %327 = arith.maximumf %325, %326 : vector<2x16xf32>
    %328 = math.rsqrt %327 : vector<2x16xf32>
    %329 = arith.mulf %322, %328 : vector<2x16xf32>
    %c0_156 = arith.constant 0 : index
    %c0_157 = arith.constant 0 : index
    %c144 = arith.constant 144 : index
    %330 = vector.load %arg6[%c0_156, %c0_157, %c144] : memref<1x2x160xf32, #tpu.memory_space<vmem>>, vector<1x2x16xf32>
    %331 = vector.shape_cast %330 : vector<1x2x16xf32> to vector<2x16xf32>
    %332 = vector.shape_cast %329 : vector<2x16xf32> to vector<1x2x16xf32>
    tpu.vector_store %arg6[%c0_156, %c0_157, %c144], %332 {strides = array<i32>} : memref<1x2x160xf32, #tpu.memory_space<vmem>>, vector<1x2x16xf32>,
    return
  }
  func.func @transform_0(%arg0: i32) -> (i32, i32, i32) {
    %c0_i32 = arith.constant 0 : i32
    %c0_i32_0 = arith.constant 0 : i32
    %c0_i32_1 = arith.constant 0 : i32
    return %arg0, %c0_i32, %c0_i32_0 : i32, i32, i32
  }
  func.func @transform_1(%arg0: i32) -> (i32, i32) {
    %c0_i32 = arith.constant 0 : i32
    %c0_i32_0 = arith.constant 0 : i32
    %c0_i32_1 = arith.constant 0 : i32
    return %c0_i32, %c0_i32_0 : i32, i32
  }
  func.func @transform_2(%arg0: i32) -> (i32, i32) {
    %c0_i32 = arith.constant 0 : i32
    %c0_i32_0 = arith.constant 0 : i32
    %c0_i32_1 = arith.constant 0 : i32
    return %c0_i32, %c0_i32_0 : i32, i32
  }
  func.func @transform_3(%arg0: i32) -> (i32, i32) {
    %c0_i32 = arith.constant 0 : i32
    %c0_i32_0 = arith.constant 0 : i32
    %c0_i32_1 = arith.constant 0 : i32
    return %c0_i32, %c0_i32_0 : i32, i32
  }
  func.func @transform_4(%arg0: i32) -> (i32, i32) {
    %c0_i32 = arith.constant 0 : i32
    %c0_i32_0 = arith.constant 0 : i32
    %c0_i32_1 = arith.constant 0 : i32
    return %c0_i32, %c0_i32_0 : i32, i32
  }
  func.func @transform_5(%arg0: i32) -> (i32, i32, i32) {
    %c0_i32 = arith.constant 0 : i32
    %c0_i32_0 = arith.constant 0 : i32
    %c0_i32_1 = arith.constant 0 : i32
    return %arg0, %c0_i32, %c0_i32_0 : i32, i32, i32
  }
}

</mosaic_0001>

<bundles_post_ra>
// kernel: tpu_custom_call.1
= control target key start
LH: loop header
LB: loop body
LE: loop exit
PB: predicated region body
PF: predicated region fallthrough
CT: control target
= control target key end

     0   :  { %s4710_s20 = smov 127   ;;  %s4711_s21 = smov 1   ;;  %s5455_s0 = inlined_call_operand.vmem [shape: f32[1,16,128], index: 0, kind: input, shape index: {}]   ;;  %s5456_s1 = inlined_call_operand.vmem [shape: f32[128,16], index: 1, kind: input, shape index: {}]   ;;  %s5457_s2 = inlined_call_operand.vmem [shape: f32[2,16], index: 2, kind: input, shape index: {}]   ;;  %s5458_s3 = inlined_call_operand.vmem [shape: f32[16,16], index: 3, kind: input, shape index: {}]   ;;  %s5459_s4 = inlined_call_operand.vmem [shape: f32[2,2], index: 4, kind: input, shape index: {}]   ;;  %s5460_s5 = inlined_call_operand.hbm [shape: f32[1,2,160], index: 5, kind: output, shape index: {}]  }
   0x1   :  { %v21_v0 = vld [vmem:[%s5455_s0] sm:$0xff] }
   0x2   :  { %43 = vrot.lane.b32.xlu1 %v21_v0, %s4710_s20  ;;  %37 = vrot.lane.b32.xlu0 %v21_v0, %s4711_s21 }
   0x3   :  { %10 = vsyncpa [#allocation3], 0  ;;  %v22_v1 = vld [vmem:[%s5455_s0 + $0x8] sm:$0xff]  ;;  %v205_v2 = vld [vmem:[%s5456_s1] sm:$0xff]  ;;  %v23_v26 = vlaneseq  ;;  %v51_v31 = vmul.f32 2.0, %v21_v0  ;;  %s4718_s10 = smov 48  }
   0x4   :  { %v206_v3 = vld [vmem:[%s5456_s1 + $0x8] sm:$0xff]  ;;  %v207_v5 = vld [vmem:[%s5456_s1 + $0x10] sm:$0xff]  ;;  %v208_v6 = vld [vmem:[%s5456_s1 + $0x18] sm:$0xff]  ;;  %v52_v38 = vmul.f32 2.0, %v22_v1  ;;  %s4719_s11 = smov 64   ;;  %s4720_s12 = smov 80  }
   0x5   :  { %v4766_v4 = vpack.c.bf16 %v206_v3, %v205_v2  ;;  %v4776_v7 = vpack.c.bf16 %v208_v6, %v207_v5  ;;  %v209_v8 = vld [vmem:[%s5456_s1 + $0x20] sm:$0xff]  ;;  %v210_v9 = vld [vmem:[%s5456_s1 + $0x28] sm:$0xff]  ;;  %v211_v11 = vld [vmem:[%s5456_s1 + $0x30] sm:$0xff]  ;;  %v27_v27 = vand.u32 127, %v23_v26  ;;  %v4840_v29 = vshrl.u32 %v23_v26, 7  ;;  %s4721_s13 = smov 96  }
   0x6   :  { %45 = vrot.lane.b32.xlu1 %v22_v1, %s4710_s20  ;;  %39 = vrot.lane.b32.xlu0 %v22_v1, %s4711_s21  ;;  %v4786_v10 = vpack.c.bf16 %v210_v9, %v209_v8  ;;  %v212_v12 = vld [vmem:[%s5456_s1 + $0x38] sm:$0xff]  ;;  %v213_v14 = vld [vmem:[%s5456_s1 + $0x40] sm:$0xff]  ;;  %s4722_s14 = smov 112   ;;  %s4723_s15 = smov [#allocation2]  }
   0x7   :  { %4261 = vmatprep.subr.bf16.mxu0 %v4766_v4  ;;  %v4796_v13 = vpack.c.bf16 %v212_v12, %v211_v11  ;;  %v214_v15 = vld [vmem:[%s5456_s1 + $0x48] sm:$0xff]  ;;  %v215_v17 = vld [vmem:[%s5456_s1 + $0x50] sm:$0xff]  ;;  %v216_v18 = vld [vmem:[%s5456_s1 + $0x58] sm:$0xff]  ;;  %v30_v28 = vand.u32 15, %v27_v27  ;;  %v25_v32 = vadd.s32 8, %v4840_v29  ;;  %v28_v40 = vand.u32 15, %v4840_v29 }
   0x8   :  { %4263 = vmatpush3.bf16.msra.mxu0 %v4766_v4  ;;  %v4806_v16 = vpack.c.bf16 %v214_v15, %v213_v14  ;;  %v4816_v19 = vpack.c.bf16 %v216_v18, %v215_v17  ;;  %v217_v20 = vld [vmem:[%s5456_s1 + $0x60] sm:$0xff]  ;;  %v218_v21 = vld [vmem:[%s5456_s1 + $0x68] sm:$0xff]  ;;  %v219_v23 = vld [vmem:[%s5456_s1 + $0x70] sm:$0xff]  ;;  %vm59_vm2 = vcmp.lt.s32.totalorder %v4840_v29, 1  ;;  %vm70_vm3 = vcmp.lt.s32.totalorder %v4840_v29, 7  ;;  %s3404_s16 = sshll.u32 %s4723_s15, 4  ;;  %s3405_s16 = int_to_ptr.vmem [resolvable:$true] %s3404_s16 }
   0x9   :  { %4265 = vmatprep.subr.bf16.mxu0 %v4776_v7  ;;  %v4826_v22 = vpack.c.bf16 %v218_v21, %v217_v20  ;;  %v220_v24 = vld [vmem:[%s5456_s1 + $0x78] sm:$0xff]  ;;  %vm36_vm0 = vcmp.eq.s32.totalorder %v30_v28, 15  ;;  %vm4842_vm1 = vcmp.eq.s32.totalorder %v30_v28, 0  ;;  %v29_v41 = vand.u32 15, %v25_v32  ;;  %s4686_s17 = scalar_lea.vmem %s3405_s16, 64  ;;  %p4691_p1 = scmp.lt.s32.totalorder %s3405_s16, %s3405_s16 }
   0xa   :  { %v4836_v25 = vpack.c.bf16 %v220_v24, %v219_v23  ;;  %vm4854_vm4 = vcmp.eq.s32.totalorder %v28_v40, 0  ;;  %p4687_p0 = scmp.ne.s32.totalorder %s3405_s16, %s4686_s17  ;;  %p4692_p2 = scmp.lt.s32.totalorder %s4686_s17, %s4686_s17 }
   0xb   :  { %vm4858_vm5 = vcmp.eq.s32.totalorder %v29_v41, 15 }
   0xc   :  { %4267 = vmatpush3.bf16.msra.mxu0 %v4776_v7  ;;  %p4693_p3 = por %p4692_p2, %p4691_p1 }
   0xd   :  { %4269 = vmatprep.subr.bf16.mxu0 %v4786_v10 }
   0xe   :  { %p4694_p4 = pnand %p4693_p3, %p4687_p0 }
  0x10   :  { %4271 = vmatpush3.bf16.msra.mxu0 %v4786_v10 }
  0x11   :  { %4273 = vmatprep.subr.bf16.mxu0 %v4796_v13 }
  0x14   :  { %4275 = vmatpush3.bf16.msra.mxu0 %v4796_v13 }
  0x15   :  { %4277 = vmatprep.subr.bf16.mxu0 %v4806_v16 }
  0x18   :  { %4279 = vmatpush3.bf16.msra.mxu0 %v4806_v16 }
  0x19   :  { %4281 = vmatprep.subr.bf16.mxu0 %v4816_v19 }
  0x1c   :  { %4283 = vmatpush3.bf16.msra.mxu0 %v4816_v19 }
  0x1d   :  { %4285 = vmatprep.subr.bf16.mxu0 %v4826_v22 }
  0x20   :  { %4287 = vmatpush3.bf16.msra.mxu0 %v4826_v22 }
  0x21   :  { %4289 = vmatprep.subr.bf16.mxu0 %v4836_v25 }
  0x24   :  { %4291 = vmatpush3.bf16.msra.mxu0 %v4836_v25 }
  0x74   :  { %v44_v33 = vpop.permute.xlu1 %43  ;;  %v38_v34 = vpop.permute.xlu0 %37 }
  0x75   :  { %v47_v35 = vsel %vm36_vm0, 0.0, %v44_v33  ;;  %v41_v36 = vsel %vm4842_vm1, 0.0, %v38_v34 }
  0x76   :  { %v53_v37 = vadd.f32 %v51_v31, %v41_v36  ;;  %v49_v39 = vsub.f32 %v41_v36, %v47_v35 }
  0x78   :  { %v46_v42 = vpop.permute.xlu1 %45  ;;  %v40_v43 = vpop.permute.xlu0 %39  ;;  %v55_v46 = vadd.f32 %v53_v37, %v47_v35  ;;  %v57_v49 = vrot.slane %v49_v39, 7  ;;  %v68_v50 = vrot.slane %v49_v39, 1  ;;  %v64_v57 = vmul.f32 2.0, %v49_v39 }
  0x79   :  { %v48_v44 = vsel %vm36_vm0, 0.0, %v46_v42  ;;  %v42_v45 = vsel %vm4842_vm1, 0.0, %v40_v43 }
  0x7a   :  { %v50_v47 = vsub.f32 %v42_v45, %v48_v44  ;;  %v54_v48 = vadd.f32 %v52_v38, %v42_v45  ;;  %v77_v58 = vrot.slane %v55_v46, 7  ;;  %v83_v2 = vrot.slane %v55_v46, 1 }
  0x7c   :  { %v56_v53 = vadd.f32 %v54_v48, %v48_v44  ;;  %v58_v54 = vrot.slane %v50_v47, 7  ;;  %v65_v55 = vmul.f32 2.0, %v50_v47  ;;  %v69_v56 = vrot.slane %v50_v47, 1 }
  0x7e   :  { %v60_v59 = vsel %vm59_vm2, %v57_v49, %v58_v54  ;;  %v61_v60 = vsel %vm59_vm2, %v58_v54, %v57_v49  ;;  %v72_v61 = vsel %vm70_vm3, %v69_v56, %v68_v50  ;;  %v78_v1 = vrot.slane %v56_v53, 7 }
  0x7f   :  { %v62_v62 = vsel %vm4854_vm4, 0.0, %v61_v60  ;;  %v67_v63 = vadd.f32 %v65_v55, %v60_v59  ;;  %v74_v0 = vsel %vm4858_vm5, 0.0, %v72_v61  ;;  %v84_v5 = vrot.slane %v56_v53, 1 }
  0x80   :  { %v66_v3 = vadd.f32 %v64_v57, %v62_v62  ;;  %v71_v6 = vsel %vm70_vm3, %v68_v50, %v69_v56  ;;  %v79_v9 = vsel %vm59_vm2, %v77_v58, %v78_v1  ;;  %v80_v11 = vsel %vm59_vm2, %v78_v1, %v77_v58 }
  0x81   :  { %v4874_v8 = vadd.f32 %v74_v0, %v67_v63  ;;  %v81_v14 = vsel %vm4854_vm4, 0.0, %v80_v11  ;;  %v85_v15 = vsel %vm70_vm3, %v83_v2, %v84_v5  ;;  %v86_v17 = vsel %vm70_vm3, %v84_v5, %v83_v2 }
  0x82   :  { %v4880_v12 = vadd.f32 %v71_v6, %v66_v3  ;;  %v88_v18 = vsel %vm4858_vm5, 0.0, %v86_v17  ;;  %v4890_v20 = vsub.f32 %v81_v14, %v85_v15 }
  0x83   :  { %v4892_v21 = vsub.f32 %v79_v9, %v88_v18  ;;  %v4898_v24 = vand.u32 2147483647, %v4874_v8  ;;  %v92_v58 = vmul.f32 %v4874_v8, %v4874_v8  ;;  %vm176_vm15 = vcmp.lt.f32.partialorder %v4874_v8, 0.0 }
  0x84   :  { %v4895_v23 = vand.u32 2147483647, %v4880_v12  ;;  %v4901_v26 = vand.u32 2147483647, %v4890_v20  ;;  %v91_v54 = vmul.f32 %v4880_v12, %v4880_v12  ;;  %v93_v55 = vmul.f32 %v4890_v20, %v4890_v20 }
  0x85   :  { %v4904_v27 = vand.u32 2147483647, %v4892_v21  ;;  %v94_v59 = vmul.f32 %v4892_v21, %v4892_v21  ;;  %vm169_vm10 = vcmp.lt.f32.partialorder %v4890_v20, 0.0  ;;  %vm170_vm11 = vcmp.lt.f32.partialorder %v4892_v21, 0.0 }
  0x86   :  { %v117_v28 = vmax.f32 %v4901_v26, %v4895_v23  ;;  %v119_v33 = vmin.f32 %v4901_v26, %v4895_v23  ;;  %v95_v62 = vadd.f32 %v93_v55, %v91_v54  ;;  %vm163_vm8 = vcmp.gt.f32.partialorder %v4895_v23, %v4901_v26 }
  0x87   :  { %v118_v30 = vmax.f32 %v4904_v27, %v4898_v24  ;;  %v120_v35 = vmin.f32 %v4904_v27, %v4898_v24  ;;  %v96_v1 = vadd.f32 %v94_v59, %v92_v58  ;;  %vm164_vm9 = vcmp.gt.f32.partialorder %v4898_v24, %v4904_v27 }
  0x88   :  { %v121_v31 = vmax.f32 %v117_v28, 1e-37  ;;  %vm175_vm12 = vcmp.lt.f32.partialorder %v4880_v12, 0.0  ;;  %vm99_vm13 = vcmp.eq.f32.partialorder %v95_v62, inf  ;;  %v102_v20 = vand.u32 2147483648, %v95_v62 }
  0x89   :  { %v122_v32 = vmax.f32 %v118_v30, 1e-37  ;;  %vm106_vm14 = vcmp.eq.f32.partialorder %v96_v1, inf  ;;  %vm108_vm0 = vcmp.eq.f32.partialorder %v96_v1, 0.0  ;;  %vm101_vm1 = vcmp.eq.f32.partialorder %v95_v62, 0.0 }
  0x8a   :  { %4654 = vrcp.f32 %v121_v31 }
  0x8b   :  { %4656 = vrcp.f32 %v122_v32 }
  0x94   :  { %v4655_v34 = vpop.eup %4654 }
  0x95   :  { %v124_v36 = vmul.f32 %v4655_v34, %v119_v33  ;;  %v4657_v37 = vpop.eup %4656 }
  0x96   :  { %v126_v38 = vmul.f32 %v4657_v37, %v120_v35 }
  0x97   :  { %v131_v39 = vadd.f32 1.0, %v124_v36  ;;  %v3412_v41 = vadd.f32 -1.0, %v124_v36  ;;  %vm127_vm6 = vcmp.gt.f32.partialorder %v124_v36, 0.41421357 }
  0x98   :  { %v132_v40 = vadd.f32 1.0, %v126_v38  ;;  %v3413_v43 = vadd.f32 -1.0, %v126_v38  ;;  %vm128_vm7 = vcmp.gt.f32.partialorder %v126_v38, 0.41421357 }
  0x99   :  { %4658 = vrcp.f32 %v131_v39 }
  0x9a   :  { %4660 = vrcp.f32 %v132_v40 }
  0x9b   :  { %4662 = vrsqrt.f32 %v95_v62 }
  0x9c   :  { %4664 = vrsqrt.f32 %v96_v1 }
  0xa3   :  { %v4659_v42 = vpop.eup %4658 }
  0xa4   :  { %v134_v44 = vmul.f32 %v4659_v42, %v3412_v41  ;;  %v4661_v45 = vpop.eup %4660 }
  0xa5   :  { %v136_v46 = vmul.f32 %v4661_v45, %v3413_v43  ;;  %v4663_v32 = vpop.eup %4662 }
  0xa6   :  { %v137_v47 = vsel %vm127_vm6, %v134_v44, %v124_v36  ;;  %v4665_v34 = vpop.eup %4664  ;;  %v98_v41 = vmul.f32 %v4663_v32, %v95_v62 }
  0xa7   :  { %v139_v48 = vmul.f32 %v137_v47, %v137_v47  ;;  %v138_v49 = vsel %vm128_vm7, %v136_v46, %v126_v38  ;;  %v105_v36 = vmul.f32 %v4665_v34, %v96_v1  ;;  %v109_v46 = vand.u32 2147483648, %v96_v1 }
  0xa8   :  { %v140_v50 = vmul.f32 %v138_v49, %v138_v49  ;;  %v100_v27 = vsel %vm99_vm13, %v95_v62, %v98_v41 }
  0xa9   :  { %v141_v51 = vmul.f32 0.080537446, %v139_v48  ;;  %v107_v45 = vsel %vm106_vm14, %v96_v1, %v105_v36  ;;  %v4934_v21 = vsel %vm101_vm1, %v102_v20, %v100_v27 }
  0xaa   :  { %v142_v52 = vmul.f32 0.080537446, %v140_v50 }
  0xab   :  { %v3414_v53 = vadd.f32 -0.13877685, %v141_v51 }
  0xac   :  { %v3415_v56 = vadd.f32 -0.13877685, %v142_v52  ;;  %v4712_v52 = vmov 0.0  }
  0xad   :  { %v145_v57 = vmul.f32 %v3414_v53, %v139_v48 }
  0xae   :  { %v146_v60 = vmul.f32 %v3415_v56, %v140_v50 }
  0xaf   :  { %v147_v61 = vadd.f32 0.19977711, %v145_v57  ;;  %v4943_v57 = vsub.f32 1.0, %v4934_v21 }
  0xb0   :  { %v148_v63 = vadd.f32 0.19977711, %v146_v60 }
  0xb1   :  { %v149_v0 = vmul.f32 %v147_v61, %v139_v48 }
  0xb2   :  { %v150_v2 = vmul.f32 %v148_v63, %v140_v50 }
  0xb3   :  { %v3416_v3 = vadd.f32 -0.3333295, %v149_v0 }
  0xb4   :  { %v3417_v5 = vadd.f32 -0.3333295, %v150_v2 }
  0xb5   :  { %v153_v6 = vmul.f32 %v3416_v3, %v139_v48 }
  0xb6   :  { %v154_v9 = vmul.f32 %v3417_v5, %v140_v50  ;;  %v4936_v50 = vsel %vm108_vm0, %v109_v46, %v107_v45 }
  0xb7   :  { %v155_v11 = vmul.f32 %v153_v6, %v137_v47  ;;  %v4946_v58 = vsub.f32 1.0, %v4936_v50 }
  0xb8   :  { %v156_v14 = vmul.f32 %v154_v9, %v138_v49 }
  0xb9   :  { %v157_v15 = vadd.f32 %v155_v11, %v137_v47 }
  0xba   :  { %v158_v17 = vadd.f32 %v156_v14, %v138_v49 }
  0xbb   :  { %v159_v18 = vadd.f32 0.7853982, %v157_v15 }
  0xbc   :  { %v160_v28 = vadd.f32 0.7853982, %v158_v17 }
  0xbd   :  { %v161_v30 = vsel %vm127_vm6, %v159_v18, %v157_v15 }
  0xbe   :  { %v165_v31 = vsub.f32 1.5707964, %v161_v30  ;;  %v162_v33 = vsel %vm128_vm7, %v160_v28, %v158_v17 }
  0xbf   :  { %v166_v35 = vsub.f32 1.5707964, %v162_v33 }
  0xc0   :  { %v167_v37 = vsel %vm163_vm8, %v165_v31, %v161_v30 }
  0xc1   :  { %v171_v39 = vsub.f32 3.1415927, %v167_v37  ;;  %v168_v40 = vsel %vm164_vm9, %v166_v35, %v162_v33 }
  0xc2   :  { %v172_v42 = vsub.f32 3.1415927, %v168_v40 }
  0xc3   :  { %v173_v43 = vsel %vm169_vm10, %v171_v39, %v167_v37 }
  0xc4   :  { %v177_v38 = vsub.f32 0.0, %v173_v43  ;;  %v174_v44 = vsel %vm170_vm11, %v172_v42, %v168_v40 }
  0xc5   :  { %v178_v23 = vsub.f32 0.0, %v174_v44 }
  0xc6   :  { %v179_v26 = vsel %vm175_vm12, %v177_v38, %v173_v43 }
  0xc7   :  { %v181_v24 = vmul.f32 3.1830988, %v179_v26  ;;  %v180_v47 = vsel %vm176_vm15, %v178_v23, %v174_v44 }
  0xc8   :  { %v182_v48 = vmul.f32 3.1830988, %v180_v47 }
  0xc9   :  { %v183_v49 = vfloor.f32 %v181_v24 }
  0xca   :  { %v184_v12 = vfloor.f32 %v182_v48 }
  0xcb   :  { %vm185_vm2 = vcmp.ne.f32.partialorder %v181_v24, %v183_v49  ;;  %vm193_vm3 = vcmp.lt.f32.partialorder %v183_v49, 0.0  ;;  %v195_v51 = vadd.f32 10.0, %v183_v49 }
  0xcc   :  { %v3418_v8 = vsel %vm185_vm2, 1.0, %v4712_v52  ;;  %vm186_vm4 = vcmp.ne.f32.partialorder %v182_v48, %v184_v12  ;;  %vm194_vm5 = vcmp.lt.f32.partialorder %v184_v12, 0.0  ;;  %v196_v54 = vadd.f32 10.0, %v184_v12 }
  0xcd   :  { %v191_v53 = vadd.f32 %v3418_v8, %v183_v49  ;;  %v3419_v55 = vsel %vm186_vm4, 1.0, %v4712_v52  ;;  %v4940_v56 = vsel %vm193_vm3, %v195_v51, %v183_v49 }
  0xce   :  { %v192_v59 = vadd.f32 %v3419_v55, %v184_v12  ;;  %v4948_v60 = vsel %vm194_vm5, %v196_v54, %v184_v12  ;;  %vm225_vm7 = vcmp.eq.f32.partialorder %v4940_v56, 0.0  ;;  %vm229_vm8 = vcmp.eq.f32.partialorder %v4940_v56, 10.0 }
  0xcf   :  { %vm199_vm6 = vcmp.lt.f32.partialorder %v191_v53, 0.0  ;;  %v201_v61 = vadd.f32 10.0, %v191_v53  ;;  %vm226_vm9 = vcmp.eq.f32.partialorder %v4948_v60, 0.0  ;;  %vm230_vm10 = vcmp.eq.f32.partialorder %v4948_v60, 10.0  ;;  %vm4956_vm12 = vmor %vm225_vm7, %vm229_vm8 }
  0xd0   :  { %vm200_vm11 = vcmp.lt.f32.partialorder %v192_v59, 0.0  ;;  %v202_v62 = vadd.f32 10.0, %v192_v59  ;;  %vm549_vm13 = vcmp.eq.f32.partialorder %v4940_v56, 1.0  ;;  %v237_v1 = vsel %vm4956_vm12, %v4934_v21, 0.0  ;;  %vm4966_vm0 = vmor %vm226_vm9, %vm230_vm10 }
  0xd1   :  { %v4954_v63 = vsel %vm199_vm6, %v201_v61, %v191_v53  ;;  %v238_v5 = vsel %vm4966_vm0, %v4936_v50, 0.0  ;;  %v553_v6 = vsel %vm549_vm13, %v4934_v21, 0.0  ;;  %vm550_vm6 = vcmp.eq.f32.partialorder %v4948_v60, 1.0 }
  0xd2   :  { %vm227_vm14 = vcmp.eq.f32.partialorder %v4954_v63, 0.0  ;;  %vm233_vm15 = vcmp.eq.f32.partialorder %v4954_v63, 10.0  ;;  %vm551_vm1 = vcmp.eq.f32.partialorder %v4954_v63, 1.0  ;;  %v4971_v3 = vsel %vm200_vm11, %v202_v62, %v192_v59 }
  0xd3   :  { %vm235_vm2 = vmor %vm227_vm14, %vm233_vm15  ;;  %v555_v9 = vsel %vm551_vm1, %v4943_v57, 0.0  ;;  %vm228_vm3 = vcmp.eq.f32.partialorder %v4971_v3, 0.0  ;;  %vm234_vm4 = vcmp.eq.f32.partialorder %v4971_v3, 10.0  ;;  %vm552_vm7 = vcmp.eq.f32.partialorder %v4971_v3, 1.0 }
  0xd4   :  { %v239_v11 = vsel %vm235_vm2, %v4943_v57, 0.0  ;;  %v4981_v14 = vadd.f32 %v555_v9, %v553_v6  ;;  %vm236_vm5 = vmor %vm228_vm3, %vm234_vm4  ;;  %vm867_vm8 = vcmp.eq.f32.partialorder %v4940_v56, 2.0  ;;  %v554_v18 = vsel %vm550_vm6, %v4936_v50, 0.0 }
  0xd5   :  { %v241_v15 = vadd.f32 %v239_v11, %v237_v1  ;;  %v240_v17 = vsel %vm236_vm5, %v4946_v58, 0.0  ;;  %v556_v28 = vsel %vm552_vm7, %v4946_v58, 0.0  ;;  %vm869_vm9 = vcmp.eq.f32.partialorder %v4954_v63, 2.0 }
  0xd6   :  { %v242_v30 = vadd.f32 %v240_v17, %v238_v5  ;;  %v4990_v31 = vadd.f32 %v556_v28, %v554_v18  ;;  %v871_v32 = vsel %vm867_vm8, %v4934_v21, 0.0  ;;  %v873_v33 = vsel %vm869_vm9, %v4943_v57, 0.0 }
  0xd7   :  { %3752 = vmatprep.mubr.f32.mxu0 %v241_v15  ;;  %v4994_v34 = vadd.f32 %v873_v33, %v871_v32  ;;  %vm868_vm10 = vcmp.eq.f32.partialorder %v4948_v60, 2.0  ;;  %vm870_vm11 = vcmp.eq.f32.partialorder %v4971_v3, 2.0  ;;  %vm1185_vm12 = vcmp.eq.f32.partialorder %v4940_v56, 3.0 }
  0xd8   :  { %3753 = vmatmul.mubr.f32.vlgmr.msra.gmra.mrb[0].mxu0 %v242_v30  ;;  %v872_v35 = vsel %vm868_vm10, %v4936_v50, 0.0  ;;  %v874_v37 = vsel %vm870_vm11, %v4946_v58, 0.0  ;;  %vm1187_vm13 = vcmp.eq.f32.partialorder %v4954_v63, 3.0  ;;  %v1189_v39 = vsel %vm1185_vm12, %v4934_v21, 0.0 }
  0xd9   :  { %v5003_v40 = vadd.f32 %v874_v37, %v872_v35  ;;  %v1191_v41 = vsel %vm1187_vm13, %v4943_v57, 0.0  ;;  %vm1186_vm14 = vcmp.eq.f32.partialorder %v4948_v60, 3.0  ;;  %vm1188_vm15 = vcmp.eq.f32.partialorder %v4971_v3, 3.0 }
  0xda   :  { %v5008_v36 = vadd.f32 %v1191_v41, %v1189_v39  ;;  %v1190_v42 = vsel %vm1186_vm14, %v4936_v50, 0.0  ;;  %v1192_v43 = vsel %vm1188_vm15, %v4946_v58, 0.0  ;;  %vm1503_vm0 = vcmp.eq.f32.partialorder %v4940_v56, 4.0 }
  0xdb   :  { %v5013_v38 = vadd.f32 %v1192_v43, %v1190_v42  ;;  %vm1505_vm1 = vcmp.eq.f32.partialorder %v4954_v63, 4.0  ;;  %v1507_v44 = vsel %vm1503_vm0, %v4934_v21, 0.0  ;;  %vm1504_vm2 = vcmp.eq.f32.partialorder %v4948_v60, 4.0  ;;  %v5118_v43 = vld [vmem:[%s5459_s4] sm:$0x3]  ;;  %s4717_s4 = smov 32  }
  0xdc   :  { %v1509_v23 = vsel %vm1505_vm1, %v4943_v57, 0.0  ;;  %vm1506_vm3 = vcmp.eq.f32.partialorder %v4971_v3, 4.0  ;;  %v1508_v26 = vsel %vm1504_vm2, %v4936_v50, 0.0  ;;  %vm1821_vm4 = vcmp.eq.f32.partialorder %v4940_v56, 5.0 }
  0xdd   :  { %v5022_v45 = vadd.f32 %v1509_v23, %v1507_v44  ;;  %v1510_v24 = vsel %vm1506_vm3, %v4946_v58, 0.0  ;;  %vm1823_vm5 = vcmp.eq.f32.partialorder %v4954_v63, 5.0  ;;  %v1825_v27 = vsel %vm1821_vm4, %v4934_v21, 0.0 }
  0xde   :  { %v5027_v20 = vadd.f32 %v1510_v24, %v1508_v26  ;;  %v1827_v46 = vsel %vm1823_vm5, %v4943_v57, 0.0  ;;  %vm1822_vm6 = vcmp.eq.f32.partialorder %v4948_v60, 5.0  ;;  %vm1824_vm7 = vcmp.eq.f32.partialorder %v4971_v3, 5.0 }
  0xdf   :  { %v5032_v47 = vadd.f32 %v1827_v46, %v1825_v27  ;;  %v1826_v48 = vsel %vm1822_vm6, %v4936_v50, 0.0  ;;  %v1828_v49 = vsel %vm1824_vm7, %v4946_v58, 0.0  ;;  %vm2139_vm8 = vcmp.eq.f32.partialorder %v4940_v56, 6.0 }
  0xe0   :  { %v5037_v12 = vadd.f32 %v1828_v49, %v1826_v48  ;;  %vm2141_vm9 = vcmp.eq.f32.partialorder %v4954_v63, 6.0  ;;  %v2143_v51 = vsel %vm2139_vm8, %v4934_v21, 0.0  ;;  %vm2140_vm10 = vcmp.eq.f32.partialorder %v4948_v60, 6.0 }
  0xe1   :  { %v2145_v8 = vsel %vm2141_vm9, %v4943_v57, 0.0  ;;  %vm2142_vm11 = vcmp.eq.f32.partialorder %v4971_v3, 6.0  ;;  %v2144_v53 = vsel %vm2140_vm10, %v4936_v50, 0.0  ;;  %vm2457_vm12 = vcmp.eq.f32.partialorder %v4940_v56, 7.0 }
  0xe2   :  { %v5046_v54 = vadd.f32 %v2145_v8, %v2143_v51  ;;  %v2146_v55 = vsel %vm2142_vm11, %v4946_v58, 0.0  ;;  %vm2459_vm13 = vcmp.eq.f32.partialorder %v4954_v63, 7.0  ;;  %v2461_v59 = vsel %vm2457_vm12, %v4934_v21, 0.0 }
  0xe3   :  { %v5051_v61 = vadd.f32 %v2146_v55, %v2144_v53  ;;  %v2463_v62 = vsel %vm2459_vm13, %v4943_v57, 0.0  ;;  %vm2458_vm14 = vcmp.eq.f32.partialorder %v4948_v60, 7.0  ;;  %vm2460_vm15 = vcmp.eq.f32.partialorder %v4971_v3, 7.0 }
  0xe4   :  { %v5056_v0 = vadd.f32 %v2463_v62, %v2461_v59  ;;  %v2462_v1 = vsel %vm2458_vm14, %v4936_v50, 0.0  ;;  %v2464_v2 = vsel %vm2460_vm15, %v4946_v58, 0.0  ;;  %vm2775_vm0 = vcmp.eq.f32.partialorder %v4940_v56, 8.0 }
  0xe5   :  { %v5061_v5 = vadd.f32 %v2464_v2, %v2462_v1  ;;  %vm2777_vm1 = vcmp.eq.f32.partialorder %v4954_v63, 8.0  ;;  %v2779_v6 = vsel %vm2775_vm0, %v4934_v21, 0.0  ;;  %vm2776_vm2 = vcmp.eq.f32.partialorder %v4948_v60, 8.0 }
  0xe6   :  { %v2781_v9 = vsel %vm2777_vm1, %v4943_v57, 0.0  ;;  %vm2778_vm3 = vcmp.eq.f32.partialorder %v4971_v3, 8.0  ;;  %v2780_v11 = vsel %vm2776_vm2, %v4936_v50, 0.0  ;;  %vm3081_vm4 = vcmp.eq.f32.partialorder %v4940_v56, 9.0 }
  0xe7   :  { %v5070_v15 = vadd.f32 %v2781_v9, %v2779_v6  ;;  %v2782_v17 = vsel %vm2778_vm3, %v4946_v58, 0.0  ;;  %vm3083_vm5 = vcmp.eq.f32.partialorder %v4954_v63, 9.0  ;;  %v3085_v18 = vsel %vm3081_vm4, %v4934_v21, 0.0  ;;  %v223_v63 = vld [vmem:[%s5458_s3 + $0x8] sm:$0xff] }
  0xe8   :  { %v5075_v28 = vadd.f32 %v2782_v17, %v2780_v11  ;;  %v3087_v30 = vsel %vm3083_vm5, %v4943_v57, 0.0  ;;  %vm3082_vm6 = vcmp.eq.f32.partialorder %v4948_v60, 9.0  ;;  %vm3084_vm7 = vcmp.eq.f32.partialorder %v4971_v3, 9.0 }
  0xe9   :  { %v5080_v32 = vadd.f32 %v3087_v30, %v3085_v18  ;;  %v3086_v56 = vsel %vm3082_vm6, %v4936_v50, 0.0  ;;  %v3088_v33 = vsel %vm3084_vm7, %v4946_v58, 0.0  ;;  %v4713_v37 = vmov 0.0|0.0   ;;  %v5095_v50 = vld [vmem:[%s5457_s2] sm:$0x3] }
  0xea   :  { %v5084_v35 = vadd.f32 %v3088_v33, %v3086_v56  ;;  %4292 = vmatprep.subr.bf16.mxu1 %v4713_v37  ;;  %4330 = vmatprep.subr.bf16.mxu0 %v4713_v37  ;;  %vm4714_vm8 = vmmov 0   ;;  %vm318_vm9 = vcmask 130048   ;;  %v222_v58 = vld [vmem:[%s5458_s3] sm:$0xff]  ;;  %vm470_vm10 = vcmask 1041408   ;;  %s4716_s3 = smov 16  }
  0xeb   :  { %3759 = vmatprep.mubr.msk.f32.mxu1 %vm4714_vm8, %v4712_v52  ;;  %3813 = vmatprep.mubr.msk.f32.mxu0 %vm4714_vm8, %v4712_v52  ;;  %v5108_v3 = vpack.c.bf16 %v223_v63, %v222_v58  ;;  %vm466_vm11 = vcmask 15360   ;;  %vm547_vm12 = vcmask 123904   ;;  %v4715_v2 = vmov 1983009808  }
  0xec   :  { %v856_v6 = vunpack.c.l.s4 %v4715_v2  ;;  %vm865_vm13 = vcmask 255104   ;;  %vm1183_vm14 = vcmask 386304   ;;  %vm1501_vm15 = vcmask 517504  }
  0xed   :  { %vm1819_vm0 = vcmask 648704   ;;  %vm2137_vm1 = vcmask 779904   ;;  %vm2455_vm2 = vcmask 911104   ;;  %vm2773_vm3 = vcmask 1042304  }
  0xee   :  { %v857_v9 = vunpack.c.0.s8 %v856_v6 }
  0xf0   :  { %v5180_v11 = vsub.s32 %v857_v9, %v4840_v29 }
 0x1ab   :  { %v3754_v21 = vpop.f32.mrb[0].mxu0 }
 0x1ac   :  { %v309_v57 = vpop.f32.mrb[1].mxu0 }
 0x1ad   :  { %v4293_v60 = vpack.c.bf16 %v3754_v21, %v309_v57 }
 0x1af   :  { %4294 = vmatpush3.bf16.msra.mxu1 %v4293_v60 }
 0x1b0   :  { %4295 = vmatprep.subr.bf16.mxu1 %v4713_v37 }
 0x1b2   :  { %3760 = vmatmul.mubr.msk.f32.vlgmr.msra.gmra.mrb[0].mxu1 %vm318_vm9, %v5095_v50 }
 0x1b3   :  { %3766 = vmatprep.mubr.msk.f32.mxu1 %vm4714_vm8, %v4712_v52  ;;  %4297 = vmatpush3.bf16.msra.mxu1 %v5108_v3 }
 0x1b4   :  { %3769 = vmatprep.subr.mxu1 %v4712_v52 }
 0x285   :  { %v388_v39 = vpop.f32.mrb[0].mxu1 }
 0x286   :  { %v392_v41 = vmul.f32 %v388_v39, %v388_v39  ;;  %v3761_v42 = vpop.f32.mrb[1].mxu1 }
 0x288   :  { %3767 = vmatmul.mubr.msk.f32.vlgmr.msra.gmra.mrb[2].mxu1 %vm318_vm9, %v392_v41 }
 0x289   :  { %3771 = vmatprep.mubr.msk.f32.mxu1 %vm4714_vm8, %v4712_v52 }
 0x35b   :  { %v462_v44 = vpop.f32.mrb[2].mxu1 }
 0x35c   :  { %v3768_v23 = vpop.f32.mrb[3].mxu1  ;;  %3770 = vmatpush3.msk.msra.mxu1 %vm470_vm10, %v462_v44 }
 0x35d   :  { %3772 = vmatmul.mubr.msk.f32.vlgmr.msra.gmra.mrb[4].mxu1 %vm466_vm11, %v5118_v43  ;;  %4299 = vmatprep.subr.bf16.mxu1 %v4766_v4 }
 0x35e   :  { %4301 = vmatpush3.bf16.msra.mxu1 %v4766_v4  ;;  %3806 = vmatprep.mubr.f32.mxu1 %v4981_v14 }
 0x35f   :  { %4303 = vmatprep.subr.bf16.mxu1 %v4776_v7 }
 0x362   :  { %4305 = vmatpush3.bf16.msra.mxu1 %v4776_v7 }
 0x363   :  { %4307 = vmatprep.subr.bf16.mxu1 %v4786_v10 }
 0x366   :  { %4309 = vmatpush3.bf16.msra.mxu1 %v4786_v10 }
 0x367   :  { %4311 = vmatprep.subr.bf16.mxu1 %v4796_v13 }
 0x36a   :  { %4313 = vmatpush3.bf16.msra.mxu1 %v4796_v13 }
 0x36b   :  { %4315 = vmatprep.subr.bf16.mxu1 %v4806_v16 }
 0x36e   :  { %4317 = vmatpush3.bf16.msra.mxu1 %v4806_v16 }
 0x36f   :  { %4319 = vmatprep.subr.bf16.mxu1 %v4816_v19 }
 0x372   :  { %4321 = vmatpush3.bf16.msra.mxu1 %v4816_v19 }
 0x373   :  { %4323 = vmatprep.subr.bf16.mxu1 %v4826_v22 }
 0x376   :  { %4325 = vmatpush3.bf16.msra.mxu1 %v4826_v22 }
 0x377   :  { %4327 = vmatprep.subr.bf16.mxu1 %v4836_v25 }
 0x37a   :  { %4329 = vmatpush3.bf16.msra.mxu1 %v4836_v25 }
 0x37b   :  { %4368 = vmatprep.subr.bf16.mxu1 %v4713_v37 }
 0x37d   :  { %3807 = vmatmul.mubr.f32.vlgmr.msra.gmra.mrb[6].mxu1 %v4990_v31 }
 0x37e   :  { %3867 = vmatprep.mubr.msk.f32.mxu1 %vm4714_vm8, %v4712_v52 }
 0x430   :  { %v540_v14 = vpop.f32.mrb[4].mxu1 }
 0x431   :  { %v544_v26 = vmax.f32 %v540_v14, 1e-24  ;;  %v3773_v24 = vpop.f32.mrb[5].mxu1 }
 0x433   :  { %4666 = vrsqrt.f32 %v544_v26 }
 0x43d   :  { %v4667_v27 = vpop.eup %4666 }
 0x43e   :  { %v546_v46 = vmul.f32 %v4667_v27, %v388_v39 }
 0x440   :  { %548 = vst.msk [vmem:[#allocation2] sm:$0x3] %vm547_vm12, %v546_v46 }
 0x450   :  { %v3808_v48 = vpop.f32.mrb[6].mxu1 }
 0x451   :  { %v625_v49 = vpop.f32.mrb[7].mxu1 }
 0x452   :  { %v4331_v51 = vpack.c.bf16 %v3808_v48, %v625_v49 }
 0x454   :  { %4332 = vmatpush3.bf16.msra.mxu0 %v4331_v51 }
 0x455   :  { %4333 = vmatprep.subr.bf16.mxu0 %v4713_v37 }
 0x457   :  { %3814 = vmatmul.mubr.msk.f32.vlgmr.msra.gmra.mrb[2].mxu0 %vm318_vm9, %v5095_v50 }
 0x458   :  { %4335 = vmatpush3.bf16.msra.mxu0 %v5108_v3  ;;  %3820 = vmatprep.mubr.msk.f32.mxu0 %vm4714_vm8, %v4712_v52 }
 0x459   :  { %3823 = vmatprep.subr.mxu0 %v4712_v52 }
 0x52a   :  { %v700_v31 = vpop.f32.mrb[2].mxu0 }
 0x52b   :  { %v704_v8 = vmul.f32 %v700_v31, %v700_v31  ;;  %v3815_v53 = vpop.f32.mrb[3].mxu0 }
 0x52d   :  { %3821 = vmatmul.mubr.msk.f32.vlgmr.msra.gmra.mrb[4].mxu0 %vm318_vm9, %v704_v8 }
 0x52e   :  { %3825 = vmatprep.mubr.msk.f32.mxu0 %vm4714_vm8, %v4712_v52 }
 0x600   :  { %v774_v55 = vpop.f32.mrb[4].mxu0 }
 0x601   :  { %v3822_v59 = vpop.f32.mrb[5].mxu0  ;;  %3824 = vmatpush3.msk.msra.mxu0 %vm470_vm10, %v774_v55 }
 0x602   :  { %3826 = vmatmul.mubr.msk.f32.vlgmr.msra.gmra.mrb[6].mxu0 %vm466_vm11, %v5118_v43  ;;  %4337 = vmatprep.subr.bf16.mxu0 %v4766_v4 }
 0x603   :  { %4339 = vmatpush3.bf16.msra.mxu0 %v4766_v4  ;;  %3860 = vmatprep.mubr.f32.mxu0 %v4994_v34 }
 0x604   :  { %4341 = vmatprep.subr.bf16.mxu0 %v4776_v7 }
 0x607   :  { %4343 = vmatpush3.bf16.msra.mxu0 %v4776_v7 }
 0x608   :  { %4345 = vmatprep.subr.bf16.mxu0 %v4786_v10 }
 0x60b   :  { %4347 = vmatpush3.bf16.msra.mxu0 %v4786_v10 }
 0x60c   :  { %4349 = vmatprep.subr.bf16.mxu0 %v4796_v13 }
 0x60f   :  { %4351 = vmatpush3.bf16.msra.mxu0 %v4796_v13 }
 0x610   :  { %4353 = vmatprep.subr.bf16.mxu0 %v4806_v16 }
 0x613   :  { %4355 = vmatpush3.bf16.msra.mxu0 %v4806_v16 }
 0x614   :  { %4357 = vmatprep.subr.bf16.mxu0 %v4816_v19 }
 0x617   :  { %4359 = vmatpush3.bf16.msra.mxu0 %v4816_v19 }
 0x618   :  { %4361 = vmatprep.subr.bf16.mxu0 %v4826_v22 }
 0x61b   :  { %4363 = vmatpush3.bf16.msra.mxu0 %v4826_v22 }
 0x61c   :  { %4365 = vmatprep.subr.bf16.mxu0 %v4836_v25 }
 0x61f   :  { %4367 = vmatpush3.bf16.msra.mxu0 %v4836_v25 }
 0x620   :  { %4406 = vmatprep.subr.bf16.mxu0 %v4713_v37 }
 0x622   :  { %3861 = vmatmul.mubr.f32.vlgmr.msra.gmra.mrb[8].mxu0 %v5003_v40 }
 0x623   :  { %3921 = vmatprep.mubr.msk.f32.mxu0 %vm4714_vm8, %v4712_v52 }
 0x6d5   :  { %v847_v34 = vpop.f32.mrb[6].mxu0 }
 0x6d6   :  { %v851_v62 = vmax.f32 %v847_v34, 1e-24  ;;  %v3827_v1 = vpop.f32.mrb[7].mxu0 }
 0x6d8   :  { %4668 = vrsqrt.f32 %v851_v62 }
 0x6e2   :  { %v4669_v17 = vpop.eup %4668 }
 0x6e3   :  { %v853_v18 = vmul.f32 %v4669_v17, %v700_v31 }
 0x6e5   :  { %v861_v30 = vrot.slane %v853_v18, %v5180_v11 }
 0x6e7   :  { %862 = vrot.lane.b32.xlu0 %v861_v30, %s4716_s3 }
 0x6f5   :  { %v3862_v40 = vpop.f32.mrb[8].mxu0 }
 0x6f6   :  { %v943_v56 = vpop.f32.mrb[9].mxu0 }
 0x6f7   :  { %v4369_v33 = vpack.c.bf16 %v3862_v40, %v943_v56 }
 0x6f9   :  { %4370 = vmatpush3.bf16.msra.mxu1 %v4369_v33 }
 0x6fa   :  { %4371 = vmatprep.subr.bf16.mxu1 %v4713_v37 }
 0x6fc   :  { %3868 = vmatmul.mubr.msk.f32.vlgmr.msra.gmra.mrb[8].mxu1 %vm318_vm9, %v5095_v50 }
 0x6fd   :  { %4373 = vmatpush3.bf16.msra.mxu1 %v5108_v3  ;;  %3874 = vmatprep.mubr.msk.f32.mxu1 %vm4714_vm8, %v4712_v52 }
 0x6fe   :  { %3877 = vmatprep.subr.mxu1 %v4712_v52 }
 0x759   :  { %v863_v29 = vpop.permute.xlu0 %862 }
 0x75a   :  { %866 = vst.msk [vmem:[#allocation2] sm:$0x3] %vm865_vm13, %v863_v29 }
 0x7cf   :  { %v1018_v21 = vpop.f32.mrb[8].mxu1 }
 0x7d0   :  { %v1022_v57 = vmul.f32 %v1018_v21, %v1018_v21  ;;  %v3869_v60 = vpop.f32.mrb[9].mxu1 }
 0x7d2   :  { %3875 = vmatmul.mubr.msk.f32.vlgmr.msra.gmra.mrb[10].mxu1 %vm318_vm9, %v1022_v57 }
 0x7d3   :  { %3879 = vmatprep.mubr.msk.f32.mxu1 %vm4714_vm8, %v4712_v52 }
 0x8a5   :  { %v1092_v58 = vpop.f32.mrb[10].mxu1 }
 0x8a6   :  { %v3876_v63 = vpop.f32.mrb[11].mxu1  ;;  %3878 = vmatpush3.msk.msra.mxu1 %vm470_vm10, %v1092_v58 }
 0x8a7   :  { %3880 = vmatmul.mubr.msk.f32.vlgmr.msra.gmra.mrb[12].mxu1 %vm466_vm11, %v5118_v43  ;;  %4375 = vmatprep.subr.bf16.mxu1 %v4766_v4 }
 0x8a8   :  { %4377 = vmatpush3.bf16.msra.mxu1 %v4766_v4  ;;  %3914 = vmatprep.mubr.f32.mxu1 %v5008_v36 }
 0x8a9   :  { %4379 = vmatprep.subr.bf16.mxu1 %v4776_v7 }
 0x8ac   :  { %4381 = vmatpush3.bf16.msra.mxu1 %v4776_v7 }
 0x8ad   :  { %4383 = vmatprep.subr.bf16.mxu1 %v4786_v10 }
 0x8b0   :  { %4385 = vmatpush3.bf16.msra.mxu1 %v4786_v10 }
 0x8b1   :  { %4387 = vmatprep.subr.bf16.mxu1 %v4796_v13 }
 0x8b4   :  { %4389 = vmatpush3.bf16.msra.mxu1 %v4796_v13 }
 0x8b5   :  { %4391 = vmatprep.subr.bf16.mxu1 %v4806_v16 }
 0x8b8   :  { %4393 = vmatpush3.bf16.msra.mxu1 %v4806_v16 }
 0x8b9   :  { %4395 = vmatprep.subr.bf16.mxu1 %v4816_v19 }
 0x8bc   :  { %4397 = vmatpush3.bf16.msra.mxu1 %v4816_v19 }
 0x8bd   :  { %4399 = vmatprep.subr.bf16.mxu1 %v4826_v22 }
 0x8c0   :  { %4401 = vmatpush3.bf16.msra.mxu1 %v4826_v22 }
 0x8c1   :  { %4403 = vmatprep.subr.bf16.mxu1 %v4836_v25 }
 0x8c4   :  { %4405 = vmatpush3.bf16.msra.mxu1 %v4836_v25 }
 0x8c5   :  { %4444 = vmatprep.subr.bf16.mxu1 %v4713_v37 }
 0x8c7   :  { %3915 = vmatmul.mubr.f32.vlgmr.msra.gmra.mrb[14].mxu1 %v5013_v38 }
 0x8c8   :  { %3975 = vmatprep.mubr.msk.f32.mxu1 %vm4714_vm8, %v4712_v52 }
 0x97a   :  { %v1165_v36 = vpop.f32.mrb[12].mxu1 }
 0x97b   :  { %v1169_v39 = vmax.f32 %v1165_v36, 1e-24  ;;  %v3881_v41 = vpop.f32.mrb[13].mxu1 }
 0x97d   :  { %4670 = vrsqrt.f32 %v1169_v39 }
 0x987   :  { %v4671_v42 = vpop.eup %4670 }
 0x988   :  { %v1171_v44 = vmul.f32 %v4671_v42, %v1018_v21 }
 0x98a   :  { %v1179_v23 = vrot.slane %v1171_v44, %v5180_v11 }
 0x98c   :  { %1180 = vrot.lane.b32.xlu1 %v1179_v23, %s4717_s4 }
 0x99a   :  { %v3916_v14 = vpop.f32.mrb[14].mxu1 }
 0x99b   :  { %v1261_v26 = vpop.f32.mrb[15].mxu1 }
 0x99c   :  { %v4407_v24 = vpack.c.bf16 %v3916_v14, %v1261_v26 }
 0x99e   :  { %4408 = vmatpush3.bf16.msra.mxu0 %v4407_v24 }
 0x99f   :  { %4409 = vmatprep.subr.bf16.mxu0 %v4713_v37 }
 0x9a1   :  { %3922 = vmatmul.mubr.msk.f32.vlgmr.msra.gmra.mrb[10].mxu0 %vm318_vm9, %v5095_v50 }
 0x9a2   :  { %4411 = vmatpush3.bf16.msra.mxu0 %v5108_v3  ;;  %3928 = vmatprep.mubr.msk.f32.mxu0 %vm4714_vm8, %v4712_v52 }
 0x9a3   :  { %3931 = vmatprep.subr.mxu0 %v4712_v52 }
 0x9fe   :  { %v1181_v38 = vpop.permute.xlu1 %1180 }
 0x9ff   :  { %1184 = vst.msk [vmem:[#allocation2] sm:$0x3] %vm1183_vm14, %v1181_v38 }
 0xa74   :  { %v1336_v27 = vpop.f32.mrb[10].mxu0 }
 0xa75   :  { %v1340_v46 = vmul.f32 %v1336_v27, %v1336_v27  ;;  %v3923_v48 = vpop.f32.mrb[11].mxu0 }
 0xa77   :  { %3929 = vmatmul.mubr.msk.f32.vlgmr.msra.gmra.mrb[12].mxu0 %vm318_vm9, %v1340_v46 }
 0xa78   :  { %3933 = vmatprep.mubr.msk.f32.mxu0 %vm4714_vm8, %v4712_v52 }
 0xb4a   :  { %v1410_v49 = vpop.f32.mrb[12].mxu0 }
 0xb4b   :  { %v3930_v51 = vpop.f32.mrb[13].mxu0  ;;  %3932 = vmatpush3.msk.msra.mxu0 %vm470_vm10, %v1410_v49 }
 0xb4c   :  { %3934 = vmatmul.mubr.msk.f32.vlgmr.msra.gmra.mrb[14].mxu0 %vm466_vm11, %v5118_v43  ;;  %4413 = vmatprep.subr.bf16.mxu0 %v4766_v4 }
 0xb4d   :  { %4415 = vmatpush3.bf16.msra.mxu0 %v4766_v4  ;;  %3968 = vmatprep.mubr.f32.mxu0 %v5022_v45 }
 0xb4e   :  { %4417 = vmatprep.subr.bf16.mxu0 %v4776_v7 }
 0xb51   :  { %4419 = vmatpush3.bf16.msra.mxu0 %v4776_v7 }
 0xb52   :  { %4421 = vmatprep.subr.bf16.mxu0 %v4786_v10 }
 0xb55   :  { %4423 = vmatpush3.bf16.msra.mxu0 %v4786_v10 }
 0xb56   :  { %4425 = vmatprep.subr.bf16.mxu0 %v4796_v13 }
 0xb59   :  { %4427 = vmatpush3.bf16.msra.mxu0 %v4796_v13 }
 0xb5a   :  { %4429 = vmatprep.subr.bf16.mxu0 %v4806_v16 }
 0xb5d   :  { %4431 = vmatpush3.bf16.msra.mxu0 %v4806_v16 }
 0xb5e   :  { %4433 = vmatprep.subr.bf16.mxu0 %v4816_v19 }
 0xb61   :  { %4435 = vmatpush3.bf16.msra.mxu0 %v4816_v19 }
 0xb62   :  { %4437 = vmatprep.subr.bf16.mxu0 %v4826_v22 }
 0xb65   :  { %4439 = vmatpush3.bf16.msra.mxu0 %v4826_v22 }
 0xb66   :  { %4441 = vmatprep.subr.bf16.mxu0 %v4836_v25 }
 0xb69   :  { %4443 = vmatpush3.bf16.msra.mxu0 %v4836_v25 }
 0xb6a   :  { %4482 = vmatprep.subr.bf16.mxu0 %v4713_v37 }
 0xb6c   :  { %3969 = vmatmul.mubr.f32.vlgmr.msra.gmra.mrb[16].mxu0 %v5027_v20 }
 0xb6d   :  { %4029 = vmatprep.mubr.msk.f32.mxu0 %vm4714_vm8, %v4712_v52 }
 0xc1f   :  { %v1483_v45 = vpop.f32.mrb[14].mxu0 }
 0xc20   :  { %v1487_v31 = vmax.f32 %v1483_v45, 1e-24  ;;  %v3935_v8 = vpop.f32.mrb[15].mxu0 }
 0xc22   :  { %4672 = vrsqrt.f32 %v1487_v31 }
 0xc2c   :  { %v4673_v53 = vpop.eup %4672 }
 0xc2d   :  { %v1489_v55 = vmul.f32 %v4673_v53, %v1336_v27 }
 0xc2f   :  { %v1497_v59 = vrot.slane %v1489_v55, %v5180_v11 }
 0xc31   :  { %1498 = vrot.lane.b32.xlu0 %v1497_v59, %s4718_s10 }
 0xc3f   :  { %v3970_v34 = vpop.f32.mrb[16].mxu0 }
 0xc40   :  { %v1579_v62 = vpop.f32.mrb[17].mxu0 }
 0xc41   :  { %v4445_v1 = vpack.c.bf16 %v3970_v34, %v1579_v62 }
 0xc43   :  { %4446 = vmatpush3.bf16.msra.mxu1 %v4445_v1 }
 0xc44   :  { %4447 = vmatprep.subr.bf16.mxu1 %v4713_v37 }
 0xc46   :  { %3976 = vmatmul.mubr.msk.f32.vlgmr.msra.gmra.mrb[16].mxu1 %vm318_vm9, %v5095_v50 }
 0xc47   :  { %4449 = vmatpush3.bf16.msra.mxu1 %v5108_v3  ;;  %3982 = vmatprep.mubr.msk.f32.mxu1 %vm4714_vm8, %v4712_v52 }
 0xc48   :  { %3985 = vmatprep.subr.mxu1 %v4712_v52 }
 0xca3   :  { %v1499_v20 = vpop.permute.xlu0 %1498 }
 0xca4   :  { %1502 = vst.msk [vmem:[#allocation2] sm:$0x3] %vm1501_vm15, %v1499_v20 }
 0xd19   :  { %v1654_v2 = vpop.f32.mrb[16].mxu1 }
 0xd1a   :  { %v1658_v6 = vmul.f32 %v1654_v2, %v1654_v2  ;;  %v3977_v9 = vpop.f32.mrb[17].mxu1 }
 0xd1c   :  { %3983 = vmatmul.mubr.msk.f32.vlgmr.msra.gmra.mrb[18].mxu1 %vm318_vm9, %v1658_v6 }
 0xd1d   :  { %3987 = vmatprep.mubr.msk.f32.mxu1 %vm4714_vm8, %v4712_v52 }
 0xdef   :  { %v1728_v17 = vpop.f32.mrb[18].mxu1 }
 0xdf0   :  { %v3984_v18 = vpop.f32.mrb[19].mxu1  ;;  %3986 = vmatpush3.msk.msra.mxu1 %vm470_vm10, %v1728_v17 }
 0xdf1   :  { %3988 = vmatmul.mubr.msk.f32.vlgmr.msra.gmra.mrb[20].mxu1 %vm466_vm11, %v5118_v43  ;;  %4451 = vmatprep.subr.bf16.mxu1 %v4766_v4 }
 0xdf2   :  { %4453 = vmatpush3.bf16.msra.mxu1 %v4766_v4  ;;  %4022 = vmatprep.mubr.f32.mxu1 %v5032_v47 }
 0xdf3   :  { %4455 = vmatprep.subr.bf16.mxu1 %v4776_v7 }
 0xdf6   :  { %4457 = vmatpush3.bf16.msra.mxu1 %v4776_v7 }
 0xdf7   :  { %4459 = vmatprep.subr.bf16.mxu1 %v4786_v10 }
 0xdfa   :  { %4461 = vmatpush3.bf16.msra.mxu1 %v4786_v10 }
 0xdfb   :  { %4463 = vmatprep.subr.bf16.mxu1 %v4796_v13 }
 0xdfe   :  { %4465 = vmatpush3.bf16.msra.mxu1 %v4796_v13 }
 0xdff   :  { %4467 = vmatprep.subr.bf16.mxu1 %v4806_v16 }
 0xe02   :  { %4469 = vmatpush3.bf16.msra.mxu1 %v4806_v16 }
 0xe03   :  { %4471 = vmatprep.subr.bf16.mxu1 %v4816_v19 }
 0xe06   :  { %4473 = vmatpush3.bf16.msra.mxu1 %v4816_v19 }
 0xe07   :  { %4475 = vmatprep.subr.bf16.mxu1 %v4826_v22 }
 0xe0a   :  { %4477 = vmatpush3.bf16.msra.mxu1 %v4826_v22 }
 0xe0b   :  { %4479 = vmatprep.subr.bf16.mxu1 %v4836_v25 }
 0xe0e   :  { %4481 = vmatpush3.bf16.msra.mxu1 %v4836_v25 }
 0xe0f   :  { %4520 = vmatprep.subr.bf16.mxu1 %v4713_v37 }
 0xe11   :  { %4023 = vmatmul.mubr.f32.vlgmr.msra.gmra.mrb[22].mxu1 %v5037_v12 }
 0xe12   :  { %4083 = vmatprep.mubr.msk.f32.mxu1 %vm4714_vm8, %v4712_v52 }
 0xec4   :  { %v1801_v47 = vpop.f32.mrb[20].mxu1 }
 0xec5   :  { %v1805_v30 = vmax.f32 %v1801_v47, 1e-24  ;;  %v3989_v40 = vpop.f32.mrb[21].mxu1 }
 0xec7   :  { %4674 = vrsqrt.f32 %v1805_v30 }
 0xed1   :  { %v4675_v56 = vpop.eup %4674 }
 0xed2   :  { %v1807_v33 = vmul.f32 %v4675_v56, %v1654_v2 }
 0xed4   :  { %v1815_v29 = vrot.slane %v1807_v33, %v5180_v11 }
 0xed6   :  { %1816 = vrot.lane.b32.xlu1 %v1815_v29, %s4719_s11 }
 0xee4   :  { %v4024_v21 = vpop.f32.mrb[22].mxu1 }
 0xee5   :  { %v1897_v57 = vpop.f32.mrb[23].mxu1 }
 0xee6   :  { %v4483_v60 = vpack.c.bf16 %v4024_v21, %v1897_v57 }
 0xee8   :  { %4484 = vmatpush3.bf16.msra.mxu0 %v4483_v60 }
 0xee9   :  { %4485 = vmatprep.subr.bf16.mxu0 %v4713_v37 }
 0xeeb   :  { %4030 = vmatmul.mubr.msk.f32.vlgmr.msra.gmra.mrb[18].mxu0 %vm318_vm9, %v5095_v50 }
 0xeec   :  { %4487 = vmatpush3.bf16.msra.mxu0 %v5108_v3  ;;  %4036 = vmatprep.mubr.msk.f32.mxu0 %vm4714_vm8, %v4712_v52 }
 0xeed   :  { %4039 = vmatprep.subr.mxu0 %v4712_v52 }
 0xf48   :  { %v1817_v12 = vpop.permute.xlu1 %1816 }
 0xf49   :  { %1820 = vst.msk [vmem:[#allocation2] sm:$0x3] %vm1819_vm0, %v1817_v12 }
 0xfbe   :  { %v1972_v58 = vpop.f32.mrb[18].mxu0 }
 0xfbf   :  { %v1976_v63 = vmul.f32 %v1972_v58, %v1972_v58  ;;  %v4031_v36 = vpop.f32.mrb[19].mxu0 }
 0xfc1   :  { %4037 = vmatmul.mubr.msk.f32.vlgmr.msra.gmra.mrb[20].mxu0 %vm318_vm9, %v1976_v63 }
 0xfc2   :  { %4041 = vmatprep.mubr.msk.f32.mxu0 %vm4714_vm8, %v4712_v52 }
0x1094   :  { %v2046_v39 = vpop.f32.mrb[20].mxu0 }
0x1095   :  { %v4038_v41 = vpop.f32.mrb[21].mxu0  ;;  %4040 = vmatpush3.msk.msra.mxu0 %vm470_vm10, %v2046_v39 }
0x1096   :  { %4042 = vmatmul.mubr.msk.f32.vlgmr.msra.gmra.mrb[22].mxu0 %vm466_vm11, %v5118_v43  ;;  %4489 = vmatprep.subr.bf16.mxu0 %v4766_v4 }
0x1097   :  { %4491 = vmatpush3.bf16.msra.mxu0 %v4766_v4  ;;  %4076 = vmatprep.mubr.f32.mxu0 %v5046_v54 }
0x1098   :  { %4493 = vmatprep.subr.bf16.mxu0 %v4776_v7 }
0x109b   :  { %4495 = vmatpush3.bf16.msra.mxu0 %v4776_v7 }
0x109c   :  { %4497 = vmatprep.subr.bf16.mxu0 %v4786_v10 }
0x109f   :  { %4499 = vmatpush3.bf16.msra.mxu0 %v4786_v10 }
0x10a0   :  { %4501 = vmatprep.subr.bf16.mxu0 %v4796_v13 }
0x10a3   :  { %4503 = vmatpush3.bf16.msra.mxu0 %v4796_v13 }
0x10a4   :  { %4505 = vmatprep.subr.bf16.mxu0 %v4806_v16 }
0x10a7   :  { %4507 = vmatpush3.bf16.msra.mxu0 %v4806_v16 }
0x10a8   :  { %4509 = vmatprep.subr.bf16.mxu0 %v4816_v19 }
0x10ab   :  { %4511 = vmatpush3.bf16.msra.mxu0 %v4816_v19 }
0x10ac   :  { %4513 = vmatprep.subr.bf16.mxu0 %v4826_v22 }
0x10af   :  { %4515 = vmatpush3.bf16.msra.mxu0 %v4826_v22 }
0x10b0   :  { %4517 = vmatprep.subr.bf16.mxu0 %v4836_v25 }
0x10b3   :  { %4519 = vmatpush3.bf16.msra.mxu0 %v4836_v25 }
0x10b4   :  { %4558 = vmatprep.subr.bf16.mxu0 %v4713_v37 }
0x10b6   :  { %4077 = vmatmul.mubr.f32.vlgmr.msra.gmra.mrb[24].mxu0 %v5051_v61 }
0x10b7   :  { %4137 = vmatprep.mubr.msk.f32.mxu0 %vm4714_vm8, %v4712_v52 }
0x1169   :  { %v2119_v54 = vpop.f32.mrb[22].mxu0 }
0x116a   :  { %v2123_v42 = vmax.f32 %v2119_v54, 1e-24  ;;  %v4043_v44 = vpop.f32.mrb[23].mxu0 }
0x116c   :  { %4676 = vrsqrt.f32 %v2123_v42 }
0x1176   :  { %v4677_v23 = vpop.eup %4676 }
0x1177   :  { %v2125_v14 = vmul.f32 %v4677_v23, %v1972_v58 }
0x1179   :  { %v2133_v26 = vrot.slane %v2125_v14, %v5180_v11 }
0x117b   :  { %2134 = vrot.lane.b32.xlu0 %v2133_v26, %s4720_s12 }
0x1189   :  { %v4078_v24 = vpop.f32.mrb[24].mxu0 }
0x118a   :  { %v2215_v38 = vpop.f32.mrb[25].mxu0 }
0x118b   :  { %v4521_v27 = vpack.c.bf16 %v4078_v24, %v2215_v38 }
0x118d   :  { %4522 = vmatpush3.bf16.msra.mxu1 %v4521_v27 }
0x118e   :  { %4523 = vmatprep.subr.bf16.mxu1 %v4713_v37 }
0x1190   :  { %4084 = vmatmul.mubr.msk.f32.vlgmr.msra.gmra.mrb[24].mxu1 %vm318_vm9, %v5095_v50 }
0x1191   :  { %4525 = vmatpush3.bf16.msra.mxu1 %v5108_v3  ;;  %4090 = vmatprep.mubr.msk.f32.mxu1 %vm4714_vm8, %v4712_v52 }
0x1192   :  { %4093 = vmatprep.subr.mxu1 %v4712_v52 }
0x11ed   :  { %v2135_v61 = vpop.permute.xlu0 %2134 }
0x11ee   :  { %2138 = vst.msk [vmem:[#allocation2] sm:$0x3] %vm2137_vm1, %v2135_v61 }
0x1263   :  { %v2290_v46 = vpop.f32.mrb[24].mxu1 }
0x1264   :  { %v2294_v48 = vmul.f32 %v2290_v46, %v2290_v46  ;;  %v4085_v49 = vpop.f32.mrb[25].mxu1 }
0x1266   :  { %4091 = vmatmul.mubr.msk.f32.vlgmr.msra.gmra.mrb[26].mxu1 %vm318_vm9, %v2294_v48 }
0x1267   :  { %4095 = vmatprep.mubr.msk.f32.mxu1 %vm4714_vm8, %v4712_v52 }
0x1339   :  { %v2364_v51 = vpop.f32.mrb[26].mxu1 }
0x133a   :  { %v4092_v45 = vpop.f32.mrb[27].mxu1  ;;  %4094 = vmatpush3.msk.msra.mxu1 %vm470_vm10, %v2364_v51 }
0x133b   :  { %4096 = vmatmul.mubr.msk.f32.vlgmr.msra.gmra.mrb[28].mxu1 %vm466_vm11, %v5118_v43  ;;  %4527 = vmatprep.subr.bf16.mxu1 %v4766_v4 }
0x133c   :  { %4529 = vmatpush3.bf16.msra.mxu1 %v4766_v4  ;;  %4130 = vmatprep.mubr.f32.mxu1 %v5056_v0 }
0x133d   :  { %4531 = vmatprep.subr.bf16.mxu1 %v4776_v7 }
0x1340   :  { %4533 = vmatpush3.bf16.msra.mxu1 %v4776_v7 }
0x1341   :  { %4535 = vmatprep.subr.bf16.mxu1 %v4786_v10 }
0x1344   :  { %4537 = vmatpush3.bf16.msra.mxu1 %v4786_v10 }
0x1345   :  { %4539 = vmatprep.subr.bf16.mxu1 %v4796_v13 }
0x1348   :  { %4541 = vmatpush3.bf16.msra.mxu1 %v4796_v13 }
0x1349   :  { %4543 = vmatprep.subr.bf16.mxu1 %v4806_v16 }
0x134c   :  { %4545 = vmatpush3.bf16.msra.mxu1 %v4806_v16 }
0x134d   :  { %4547 = vmatprep.subr.bf16.mxu1 %v4816_v19 }
0x1350   :  { %4549 = vmatpush3.bf16.msra.mxu1 %v4816_v19 }
0x1351   :  { %4551 = vmatprep.subr.bf16.mxu1 %v4826_v22 }
0x1354   :  { %4553 = vmatpush3.bf16.msra.mxu1 %v4826_v22 }
0x1355   :  { %4555 = vmatprep.subr.bf16.mxu1 %v4836_v25 }
0x1358   :  { %4557 = vmatpush3.bf16.msra.mxu1 %v4836_v25 }
0x1359   :  { %4596 = vmatprep.subr.bf16.mxu1 %v4713_v37 }
0x135b   :  { %4131 = vmatmul.mubr.f32.vlgmr.msra.gmra.mrb[30].mxu1 %v5061_v5 }
0x135c   :  { %4191 = vmatprep.mubr.msk.f32.mxu1 %vm4714_vm8, %v4712_v52 }
0x140e   :  { %v2437_v0 = vpop.f32.mrb[28].mxu1 }
0x140f   :  { %v2441_v31 = vmax.f32 %v2437_v0, 1e-24  ;;  %v4097_v8 = vpop.f32.mrb[29].mxu1 }
0x1411   :  { %4678 = vrsqrt.f32 %v2441_v31 }
0x141b   :  { %v4679_v53 = vpop.eup %4678 }
0x141c   :  { %v2443_v55 = vmul.f32 %v4679_v53, %v2290_v46 }
0x141e   :  { %v2451_v59 = vrot.slane %v2443_v55, %v5180_v11 }
0x1420   :  { %2452 = vrot.lane.b32.xlu1 %v2451_v59, %s4721_s13 }
0x142e   :  { %v4132_v34 = vpop.f32.mrb[30].mxu1 }
0x142f   :  { %v2533_v62 = vpop.f32.mrb[31].mxu1 }
0x1430   :  { %v4559_v1 = vpack.c.bf16 %v4132_v34, %v2533_v62 }
0x1432   :  { %4560 = vmatpush3.bf16.msra.mxu0 %v4559_v1 }
0x1433   :  { %4561 = vmatprep.subr.bf16.mxu0 %v4713_v37 }
0x1435   :  { %4138 = vmatmul.mubr.msk.f32.vlgmr.msra.gmra.mrb[26].mxu0 %vm318_vm9, %v5095_v50 }
0x1436   :  { %4563 = vmatpush3.bf16.msra.mxu0 %v5108_v3  ;;  %4144 = vmatprep.mubr.msk.f32.mxu0 %vm4714_vm8, %v4712_v52 }
0x1437   :  { %4147 = vmatprep.subr.mxu0 %v4712_v52 }
0x1492   :  { %v2453_v5 = vpop.permute.xlu1 %2452 }
0x1493   :  { %2456 = vst.msk [vmem:[#allocation2] sm:$0x3] %vm2455_vm2, %v2453_v5 }
0x1508   :  { %v2608_v20 = vpop.f32.mrb[26].mxu0 }
0x1509   :  { %v2612_v2 = vmul.f32 %v2608_v20, %v2608_v20  ;;  %v4139_v6 = vpop.f32.mrb[27].mxu0 }
0x150b   :  { %4145 = vmatmul.mubr.msk.f32.vlgmr.msra.gmra.mrb[28].mxu0 %vm318_vm9, %v2612_v2 }
0x150c   :  { %4149 = vmatprep.mubr.msk.f32.mxu0 %vm4714_vm8, %v4712_v52 }
0x15de   :  { %v2682_v9 = vpop.f32.mrb[28].mxu0 }
0x15df   :  { %v4146_v17 = vpop.f32.mrb[29].mxu0  ;;  %4148 = vmatpush3.msk.msra.mxu0 %vm470_vm10, %v2682_v9 }
0x15e0   :  { %4150 = vmatmul.mubr.msk.f32.vlgmr.msra.gmra.mrb[30].mxu0 %vm466_vm11, %v5118_v43  ;;  %4565 = vmatprep.subr.bf16.mxu0 %v4766_v4 }
0x15e1   :  { %4567 = vmatpush3.bf16.msra.mxu0 %v4766_v4  ;;  %4184 = vmatprep.mubr.f32.mxu0 %v5070_v15 }
0x15e2   :  { %4569 = vmatprep.subr.bf16.mxu0 %v4776_v7 }
0x15e5   :  { %4571 = vmatpush3.bf16.msra.mxu0 %v4776_v7 }
0x15e6   :  { %4573 = vmatprep.subr.bf16.mxu0 %v4786_v10 }
0x15e9   :  { %4575 = vmatpush3.bf16.msra.mxu0 %v4786_v10 }
0x15ea   :  { %4577 = vmatprep.subr.bf16.mxu0 %v4796_v13 }
0x15ed   :  { %4579 = vmatpush3.bf16.msra.mxu0 %v4796_v13 }
0x15ee   :  { %4581 = vmatprep.subr.bf16.mxu0 %v4806_v16 }
0x15f1   :  { %4583 = vmatpush3.bf16.msra.mxu0 %v4806_v16 }
0x15f2   :  { %4585 = vmatprep.subr.bf16.mxu0 %v4816_v19 }
0x15f5   :  { %4587 = vmatpush3.bf16.msra.mxu0 %v4816_v19 }
0x15f6   :  { %4589 = vmatprep.subr.bf16.mxu0 %v4826_v22 }
0x15f9   :  { %4591 = vmatpush3.bf16.msra.mxu0 %v4826_v22 }
0x15fa   :  { %4593 = vmatprep.subr.bf16.mxu0 %v4836_v25 }
0x15fd   :  { %4595 = vmatpush3.bf16.msra.mxu0 %v4836_v25 }
0x15fe   :  { %4634 = vmatprep.subr.bf16.mxu0 %v4713_v37 }
0x1600   :  { %4185 = vmatmul.mubr.f32.vlgmr.msra.gmra.mrb[32].mxu0 %v5075_v28 }
0x1601   :  { %4245 = vmatprep.mubr.msk.f32.mxu0 %vm4714_vm8, %v4712_v52 }
0x16b3   :  { %v2755_v15 = vpop.f32.mrb[30].mxu0 }
0x16b4   :  { %v2759_v18 = vmax.f32 %v2755_v15, 1e-24  ;;  %v4151_v47 = vpop.f32.mrb[31].mxu0 }
0x16b6   :  { %4680 = vrsqrt.f32 %v2759_v18 }
0x16c0   :  { %v4681_v30 = vpop.eup %4680 }
0x16c1   :  { %v2761_v40 = vmul.f32 %v4681_v30, %v2608_v20 }
0x16c3   :  { %v2769_v56 = vrot.slane %v2761_v40, %v5180_v11 }
0x16c5   :  { %2770 = vrot.lane.b32.xlu0 %v2769_v56, %s4722_s14 }
0x16d3   :  { %v4186_v33 = vpop.f32.mrb[32].mxu0 }
0x16d4   :  { %v2851_v29 = vpop.f32.mrb[33].mxu0 }
0x16d5   :  { %v4597_v21 = vpack.c.bf16 %v4186_v33, %v2851_v29 }
0x16d7   :  { %4598 = vmatpush3.bf16.msra.mxu1 %v4597_v21 }
0x16d8   :  { %4599 = vmatprep.subr.bf16.mxu1 %v4713_v37 }
0x16da   :  { %4192 = vmatmul.mubr.msk.f32.vlgmr.msra.gmra.mrb[32].mxu1 %vm318_vm9, %v5095_v50 }
0x16db   :  { %4601 = vmatpush3.bf16.msra.mxu1 %v5108_v3  ;;  %4198 = vmatprep.mubr.msk.f32.mxu1 %vm4714_vm8, %v4712_v52 }
0x16dc   :  { %4201 = vmatprep.subr.mxu1 %v4712_v52 }
0x1737   :  { %v2771_v28 = vpop.permute.xlu0 %2770 }
0x1738   :  { %2774 = vst.msk [vmem:[#allocation2] sm:$0x3] %vm2773_vm3, %v2771_v28 }
0x17ad   :  { %v2926_v57 = vpop.f32.mrb[32].mxu1 }
0x17ae   :  { %v2930_v60 = vmul.f32 %v2926_v57, %v2926_v57  ;;  %v4193_v12 = vpop.f32.mrb[33].mxu1 }
0x17b0   :  { %4199 = vmatmul.mubr.msk.f32.vlgmr.msra.gmra.mrb[34].mxu1 %vm318_vm9, %v2930_v60 }
0x17b1   :  { %4203 = vmatprep.mubr.msk.f32.mxu1 %vm4714_vm8, %v4712_v52 }
0x1883   :  { %v3000_v58 = vpop.f32.mrb[34].mxu1 }
0x1884   :  { %v4200_v63 = vpop.f32.mrb[35].mxu1  ;;  %4202 = vmatpush3.msk.msra.mxu1 %vm470_vm10, %v3000_v58 }
0x1885   :  { %4204 = vmatmul.mubr.msk.f32.vlgmr.msra.gmra.mrb[36].mxu1 %vm466_vm11, %v5118_v43  ;;  %4603 = vmatprep.subr.bf16.mxu1 %v4766_v4 }
0x1886   :  { %4605 = vmatpush3.bf16.msra.mxu1 %v4766_v4  ;;  %4238 = vmatprep.mubr.f32.mxu1 %v5080_v32 }
0x1887   :  { %4607 = vmatprep.subr.bf16.mxu1 %v4776_v7 }
0x188a   :  { %4609 = vmatpush3.bf16.msra.mxu1 %v4776_v7 }
0x188b   :  { %4611 = vmatprep.subr.bf16.mxu1 %v4786_v10 }
0x188e   :  { %4613 = vmatpush3.bf16.msra.mxu1 %v4786_v10 }
0x188f   :  { %4615 = vmatprep.subr.bf16.mxu1 %v4796_v13 }
0x1892   :  { %4617 = vmatpush3.bf16.msra.mxu1 %v4796_v13 }
0x1893   :  { %4619 = vmatprep.subr.bf16.mxu1 %v4806_v16 }
0x1896   :  { %4621 = vmatpush3.bf16.msra.mxu1 %v4806_v16 }
0x1897   :  { %4623 = vmatprep.subr.bf16.mxu1 %v4816_v19 }
0x189a   :  { %4625 = vmatpush3.bf16.msra.mxu1 %v4816_v19 }
0x189b   :  { %4627 = vmatprep.subr.bf16.mxu1 %v4826_v22 }
0x189e   :  { %4629 = vmatpush3.bf16.msra.mxu1 %v4826_v22 }
0x189f   :  { %4631 = vmatprep.subr.bf16.mxu1 %v4836_v25 }
0x18a2   :  { %4633 = vmatpush3.bf16.msra.mxu1 %v4836_v25 }
0x18a5   :  { %4239 = vmatmul.mubr.f32.vlgmr.msra.gmra.mrb[38].mxu1 %v5084_v35 }
0x1958   :  { %v3073_v4 = vpop.f32.mrb[36].mxu1 }
0x1959   :  { %v3077_v7 = vmax.f32 %v3073_v4, 1e-24  ;;  %v4205_v10 = vpop.f32.mrb[37].mxu1 }
0x195b   :  { %4682 = vrsqrt.f32 %v3077_v7 }
0x1965   :  { %v4683_v13 = vpop.eup %4682 }
0x1966   :  { %v3079_v16 = vmul.f32 %v4683_v13, %v2926_v57 }
0x1968   :  { %3080 = vst.msk [vmem:[#allocation2 + $0x2] sm:$0x3] %vm547_vm12, %v3079_v16 }
0x1978   :  { %v4240_v32 = vpop.f32.mrb[38].mxu1 }
0x1979   :  { %v3157_v19 = vpop.f32.mrb[39].mxu1 }
0x197a   :  { %v4635_v36 = vpack.c.bf16 %v4240_v32, %v3157_v19 }
0x197c   :  { %4636 = vmatpush3.bf16.msra.mxu0 %v4635_v36 }
0x197d   :  { %4637 = vmatprep.subr.bf16.mxu0 %v4713_v37 }
0x197f   :  { %4246 = vmatmul.mubr.msk.f32.vlgmr.msra.gmra.mrb[34].mxu0 %vm318_vm9, %v5095_v50 }
0x1980   :  { %4639 = vmatpush3.bf16.msra.mxu0 %v5108_v3  ;;  %4252 = vmatprep.mubr.msk.f32.mxu0 %vm4714_vm8, %v4712_v52 }
0x1981   :  { %4255 = vmatprep.subr.mxu0 %v4712_v52 }
0x1a52   :  { %v3232_v22 = vpop.f32.mrb[34].mxu0 }
0x1a53   :  { %v3236_v25 = vmul.f32 %v3232_v22, %v3232_v22  ;;  %v4247_v35 = vpop.f32.mrb[35].mxu0 }
0x1a55   :  { %4253 = vmatmul.mubr.msk.f32.vlgmr.msra.gmra.mrb[36].mxu0 %vm318_vm9, %v3236_v25 }
0x1a56   :  { %4257 = vmatprep.mubr.msk.f32.mxu0 %vm4714_vm8, %v4712_v52 }
0x1b28   :  { %v3306_v39 = vpop.f32.mrb[36].mxu0 }
0x1b29   :  { %v4254_v37 = vpop.f32.mrb[37].mxu0  ;;  %4256 = vmatpush3.msk.msra.mxu0 %vm470_vm10, %v3306_v39 }
0x1b2a   :  { %4258 = vmatmul.mubr.msk.f32.vlgmr.msra.gmra.mrb[38].mxu0 %vm466_vm11, %v5118_v43 }
0x1bfd   :  { %v3379_v50 = vpop.f32.mrb[38].mxu0 }
0x1bfe   :  { %v3383_v3 = vmax.f32 %v3379_v50, 1e-24  ;;  %v4259_v41 = vpop.f32.mrb[39].mxu0 }
0x1c00   :  { %4684 = vrsqrt.f32 %v3383_v3 }
0x1c0a   :  { %v4685_v54 = vpop.eup %4684 }
0x1c0b   :  { %v3385_v42 = vmul.f32 %v4685_v54, %v3232_v22 }
0x1c0d   :  { %v3393_v44 = vrot.slane %v3385_v42, %v5180_v11 }
0x1c0f   :  { %3394 = vrot.lane.b32.xlu1 %v3393_v44, %s4716_s3 }
0x1c81   :  { %v3395_v52 = vpop.permute.xlu1 %3394 }
0x1c82   :  { %3397 = vst.msk [vmem:[#allocation2 + $0x2] sm:$0x3] %vm865_vm13, %v3395_v52 }
0x1c83   :  { %4697 = shalt.err (!%p4694_p4)
}
0x1c84   :  { %s4698_s20 = scalar_lea.hbm %s5460_s5, 64 }
0x1c85   :  { %p4699_p5 = scmp.ne.s32.totalorder %s5460_s5, %s4698_s20  ;;  %p4702_p6 = scmp.lt.u32.totalorder %s4698_s20, %s5460_s5 }
0x1c87   :  { %p4704_p7 = pnand %p4702_p6, %p4699_p5 }
0x1c89   :  { %4707 = shalt.err (!%p4704_p7)
}
0x1c8a   :  { %3407 = dma.vmem_to_hbm [thread:$0]  %s3405_s16, 64, %s5460_s5, [#allocation3]  }
0x1c8b   :  { %4708 = dma.done.wait [#allocation3], 64  }
0x1c8c   :  { %4709 = vsyncadd [#allocation3], 4294967232 }
0x1c8d   :  { %3411 = vsyncpa [#allocation3], 1 }

</bundles_post_ra>
